<compile_context>
chip_gen: v7x
topology: tpu7x:2x2x1
jax: 0.10.0
libtpu: 0.0.40
codegen_flags: <defaults>
</compile_context>

<pallas_src>
import functools

import jax
import jax.numpy as jnp
from jax import lax
from jax.experimental import pallas as pl
from jax.experimental.pallas import tpu as pltpu


# Upper bounds for the adaptive tiles (both kept multiples of 8).
MAX_T_CHUNK = 64
MAX_B_BLK = 64


def stacked_rnn_kernel(x_ref, wx_ref, wh_ref, b_ref,
                       w1_ref, b1_ref, wf_ref, bf_ref,
                       out_ref, h_ref, c_ref, xw_ref, hs_ref,
                       *, n_sub, mm_dtype, unroll):
    """One grid step = one (batch block, time chunk).

    x_ref  : (Tc, Bb, F_pad)        time-major input chunk
    wx_ref : (F_pad, 4*H_pad)       fused input->gate weights  (i,f,g,o)
    wh_ref : (H_pad, 4*H_pad)       fused hidden->gate weights (i,f,g,o)
    b_ref  : (1, 4*H_pad)           fused gate bias (b_ih + b_hh), f32
    w1_ref : (H_pad, LIN_pad), b1_ref: (1, LIN_pad)
    wf_ref : (LIN_pad, C_pad),  bf_ref: (1, C_pad)  (padded classes = -1e30)
    out_ref: (Tc, Bb, C_pad)        log-probs (f32)
    h_ref/c_ref : (Bb, H_pad)       recurrent state, persists across time chunks
    xw_ref : (Tc*Bb, 4*H_pad)       batched input projection scratch (f32)
    hs_ref : (Tc*Bb, H_pad)         hidden states of the chunk (f32)
    """
    Tc, Bb, _ = x_ref.shape
    Hp = h_ref.shape[-1]
    Bs = Bb // n_sub                      # rows per interleaved sub-block

    # Re-initialize the recurrent state at the start of each batch block's
    # time sweep (time is grid axis 1 and iterates innermost).
    @pl.when(pl.program_id(1) == 0)
    def _init():
        h_ref[...] = jnp.zeros(h_ref.shape, h_ref.dtype)
        c_ref[...] = jnp.zeros(c_ref.shape, c_ref.dtype)

    # Batched input projection for the whole chunk: one big MXU matmul; the
    # gate-bias broadcast happens once per chunk instead of once per timestep.
    x2d = x_ref[...].reshape(Tc * Bb, x_ref.shape[-1])            # (Tc*Bb, F)
    xw_ref[...] = (jnp.dot(x2d.astype(mm_dtype), wx_ref[...],
                           preferred_element_type=jnp.float32)
                   + b_ref[...])                                  # (Tc*Bb, 4H)

    # Recurrent loop: n_sub independent (Bs, H) @ (H, 4H) matmuls per step.
    # The sub-blocks have no cross dependency, so one sub-block's vmatmul can
    # issue while the other's sigmoid/tanh sit in the EUP slot.
    state0 = tuple(h_ref[pl.ds(s * Bs, Bs), :] for s in range(n_sub)) + \
             tuple(c_ref[pl.ds(s * Bs, Bs), :] for s in range(n_sub))

    def step(tt, state):
        h_list = list(state[:n_sub])
        c_list = list(state[n_sub:])
        row = pl.multiple_of(tt * Bb, 8)          # 8-sublane aligned slices
        for s in range(n_sub):
            r = row + s * Bs
            pre = xw_ref[pl.ds(r, Bs), :] + jnp.dot(
                h_list[s].astype(mm_dtype), wh_ref[...],
                preferred_element_type=jnp.float32)               # (Bs, 4H)
            i_g = jax.nn.sigmoid(pre[:, 0 * Hp:1 * Hp])
            f_g = jax.nn.sigmoid(pre[:, 1 * Hp:2 * Hp])
            g_g = jnp.tanh(pre[:, 2 * Hp:3 * Hp])
            o_g = jax.nn.sigmoid(pre[:, 3 * Hp:4 * Hp])
            c_n = f_g * c_list[s] + i_g * g_g
            h_n = o_g * jnp.tanh(c_n)
            hs_ref[pl.ds(r, Bs), :] = h_n
            h_list[s] = h_n
            c_list[s] = c_n
        return tuple(h_list) + tuple(c_list)

    state = lax.fori_loop(0, Tc, step, state0, unroll=unroll)

    for s in range(n_sub):
        h_ref[pl.ds(s * Bs, Bs), :] = state[s]
        c_ref[pl.ds(s * Bs, Bs), :] = state[n_sub + s]

    # Time-independent tail, batched over all Tc*Bb rows of the chunk.
    hs = hs_ref[...]                                              # (Tc*Bb, H)
    z = jnp.tanh(jnp.dot(hs.astype(mm_dtype), w1_ref[...],
                         preferred_element_type=jnp.float32) + b1_ref[...])
    logits = (jnp.dot(z.astype(mm_dtype), wf_ref[...],
                      preferred_element_type=jnp.float32) + bf_ref[...])
    # Log-softmax over the class lanes; padded classes carry a -1e30 bias so
    # they contribute exp(...) == 0 and never shift max/sum.
    m = jnp.max(logits, axis=-1, keepdims=True)
    lse = m + jnp.log(jnp.sum(jnp.exp(logits - m), axis=-1, keepdims=True))
    out_ref[...] = (logits - lse).reshape(Tc, Bb, logits.shape[-1]).astype(
        out_ref.dtype)


def _round_up(v, m):
    return ((v + m - 1) // m) * m


def _pad2(a, rows, cols):
    return jnp.pad(a, ((0, rows - a.shape[0]), (0, cols - a.shape[1])))


def stacked_rnn_forward(x, params, use_bf16=False):
    """x: (B, T, F) batch-first float32. Returns (B, T, C) log-probs.

    use_bf16: cast weight slabs + matmul LHS to bf16 (f32 accumulation, f32
    gate/elementwise math).  ~2-3x MXU throughput on v6e/v7x; loosens numerics.
    """
    wih, whh, b, w1, b1, wf, bf = params
    B, T, F = x.shape
    H = whh.shape[-1]
    LIN = w1.shape[-1]
    C = wf.shape[-1]

    Fp = _round_up(F, 128)
    Hp = _round_up(H, 128)
    Lp = _round_up(LIN, 128)
    Cp = _round_up(C, 128)

    # --- adaptive tiles (multiples of 8) -------------------------------------
    Tc = min(MAX_T_CHUNK, _round_up(T, 8))
    Bb = min(MAX_B_BLK, _round_up(B, 8))
    Bp = _round_up(B, Bb)
    # Prefer >= 2 batch blocks when the batch is big enough, so the "parallel"
    # batch axis can actually be sharded across v7x's two TensorCores.
    if Bp // Bb < 2 and Bp >= 16:
        Bb = max(8, (Bp // 2 // 8) * 8)
        Bp = _round_up(B, Bb)
    Tp = _round_up(T, Tc)

    n_sub = 2 if Bb >= 16 else 1            # interleaved recurrent sub-blocks
    unroll = True if Tc <= 16 else 8        # partial unroll for long chunks

    mm_dtype = jnp.bfloat16 if use_bf16 else jnp.float32

    # --- fuse + pad parameters (gate order i, f, g, o; zero padding) ---------
    wx = jnp.concatenate([_pad2(wih[k], Fp, Hp) for k in range(4)], axis=1)
    wh = jnp.concatenate([_pad2(whh[k], Hp, Hp) for k in range(4)], axis=1)
    bb = jnp.concatenate([_pad2(b[k], 1, Hp) for k in range(4)], axis=1)
    w1p = _pad2(w1, Hp, Lp)
    b1p = _pad2(b1, 1, Lp)
    wfp = _pad2(wf, Lp, Cp)
    # Padded class lanes get a very negative bias -> exactly ignored by softmax.
    bfp = jnp.pad(bf, ((0, 0), (0, Cp - C)), constant_values=-1e30)

    if use_bf16:
        wx, wh, w1p, wfp = (a.astype(jnp.bfloat16) for a in (wx, wh, w1p, wfp))
    # Biases stay f32 (added to the f32 accumulators).

    # --- time-major, padded input (relayout + pad fuse into one XLA copy) ----
    x_tm = jnp.pad(jnp.transpose(x, (1, 0, 2)),
                   ((0, Tp - T), (0, Bp - B), (0, Fp - F)))
    if use_bf16:
        x_tm = x_tm.astype(jnp.bfloat16)     # halves the input DMA traffic

    grid = (Bp // Bb, Tp // Tc)

    # Grid-invariant weight slabs: whole-array VMEM residents (no block
    # pipelining => single-buffered, DMA'd once, never re-fetched per step).
    vmem_full = pl.BlockSpec(memory_space=pltpu.MemorySpace.VMEM)

    # Explicit VMEM budget: actual footprint * 2, floor 32 MiB (safe default on
    # every chip), so bigger-than-default tiles don't hit the scoped limit.
    # TODO(synk): for H >= ~1500 on v7x (64 MiB VMEM), K-block the wh slab
    # along H (pltpu.emit_pipeline) instead of holding it fully resident.
    itemsize = 2 if use_bf16 else 4
    w_bytes = (wx.size + wh.size + w1p.size + wfp.size) * itemsize \
        + (bb.size + b1p.size + bfp.size) * 4
    scratch_bytes = (2 * Bb * Hp + Tc * Bb * 4 * Hp + Tc * Bb * Hp) * 4
    block_bytes = 2 * (Tc * Bb * Fp * itemsize + Tc * Bb * Cp * 4)
    vmem_limit = int(min(110 * 2**20,
                         max(32 * 2**20,
                             2 * (w_bytes + scratch_bytes + block_bytes))))

    kernel = functools.partial(stacked_rnn_kernel,
                               n_sub=n_sub, mm_dtype=mm_dtype, unroll=unroll)

    out_tm = pl.pallas_call(
        kernel,
        out_shape=jax.ShapeDtypeStruct((Tp, Bp, Cp), jnp.float32),
        grid=grid,
        in_specs=[
            pl.BlockSpec((Tc, Bb, Fp), lambda bi, ti: (ti, bi, 0)),
            vmem_full,   # wx
            vmem_full,   # wh
            vmem_full,   # gate bias
            vmem_full,   # w1
            vmem_full,   # b1
            vmem_full,   # wf
            vmem_full,   # bf
        ],
        out_specs=pl.BlockSpec((Tc, Bb, Cp), lambda bi, ti: (ti, bi, 0)),
        scratch_shapes=[
            pltpu.VMEM((Bb, Hp), jnp.float32),                  # h state
            pltpu.VMEM((Bb, Hp), jnp.float32),                  # c state
            pltpu.VMEM((Tc * Bb, 4 * Hp), jnp.float32),         # x @ Wx + b
            pltpu.VMEM((Tc * Bb, Hp), jnp.float32),             # chunk h's
        ],
        compiler_params=pltpu.CompilerParams(
            dimension_semantics=("parallel", "arbitrary"),
            vmem_limit_bytes=vmem_limit),
    )(x_tm, wx, wh, bb, w1p, b1p, wfp, bfp)

    # Unpad and return batch-first (B, T, C) to match batch_first=True.
    return jnp.transpose(out_tm[:T, :B, :C], (1, 0, 2))


def init_params(key, n_features, hidden, lin, n_classes):
    """Deterministic synthetic parameters (same shapes as the PyTorch module).
    LSTM weights gate-major, pre-transposed for right-multiplication:
      wih: (4, F, H), whh: (4, H, H), b: (4, 1, H) = bias_ih + bias_hh."""
    ks = jax.random.split(key, 8)
    kH = 1.0 / jnp.sqrt(hidden)
    kL1 = 1.0 / jnp.sqrt(hidden)
    kLf = 1.0 / jnp.sqrt(lin)
    u = lambda k, shp, s: jax.random.uniform(k, shp, jnp.float32, -s, s)

    wih = u(ks[0], (4, n_features, hidden), kH)
    whh = u(ks[1], (4, hidden, hidden), kH)
    b_ih = u(ks[2], (4, 1, hidden), kH)
    b_hh = u(ks[3], (4, 1, hidden), kH)
    bgate = b_ih + b_hh

    w1 = u(ks[4], (hidden, lin), kL1)
    b1 = u(ks[5], (1, lin), kL1)
    wf = u(ks[6], (lin, n_classes), kLf)
    bf = u(ks[7], (1, n_classes), kLf)
    return (wih, whh, bgate, w1, b1, wf, bf)


def ref_forward(x, params):
    """Pure-JAX reference replicating StackedRNN.forward (LSTM, mono,
    recurrent=[H], linear=[LIN], logsoftmax=True)."""
    wih, whh, b, w1, b1, wf, bf = params
    B = x.shape[0]
    H = whh.shape[-1]

    def cell(carry, x_t):
        h, c = carry

        def gate(k):
            return x_t @ wih[k] + h @ whh[k] + b[k]
        i = jax.nn.sigmoid(gate(0))
        f = jax.nn.sigmoid(gate(1))
        g = jnp.tanh(gate(2))
        o = jax.nn.sigmoid(gate(3))
        c2 = f * c + i * g
        h2 = o * jnp.tanh(c2)
        return (h2, c2), h2

    h0 = jnp.zeros((B, H), jnp.float32)
    c0 = jnp.zeros((B, H), jnp.float32)
    _, hs = lax.scan(cell, (h0, c0), jnp.transpose(x, (1, 0, 2)))  # (T, B, H)
    hs = jnp.transpose(hs, (1, 0, 2))                              # (B, T, H)
    z = jnp.tanh(hs @ w1 + b1[0])
    logits = z @ wf + bf[0]
    return jax.nn.log_softmax(logits, axis=-1)


if __name__ == "__main__":
    # Shapes consistent with the module defaults: batch=2, seq=8, n_features=4,
    # recurrent=[16], linear=[16], n_classes=4.
    B, T, F, H, LIN, C = 2, 8, 4, 16, 16, 4

    key = jax.random.PRNGKey(0)
    kx, kp = jax.random.split(key)
    x = jax.random.normal(kx, (B, T, F), jnp.float32)
    params = init_params(kp, F, H, LIN, C)

    fwd = jax.jit(stacked_rnn_forward)          # f32 path (tight tolerance)
    out = jax.block_until_ready(fwd(x, params))
    ref = jax.block_until_ready(ref_forward(x, params))

    assert out.shape == (B, T, C), out.shape
    max_err = float(jnp.max(jnp.abs(out - ref)))
    assert jnp.allclose(out, ref, atol=1e-4, rtol=1e-4), max_err
    print("KERNEL_OK")
</pallas_src>

<mosaic_0001>
module attributes {stable_mosaic.version = 11 : i64} {
  func.func @stacked_rnn_kernel(%arg0: i32, %arg1: i32, %arg2: memref<8x8x128xf32, #tpu.memory_space<vmem>>, %arg3: memref<128x512xf32, #tpu.memory_space<vmem>>, %arg4: memref<128x512xf32, #tpu.memory_space<vmem>>, %arg5: memref<1x512xf32, #tpu.memory_space<vmem>>, %arg6: memref<128x128xf32, #tpu.memory_space<vmem>>, %arg7: memref<1x128xf32, #tpu.memory_space<vmem>>, %arg8: memref<128x128xf32, #tpu.memory_space<vmem>>, %arg9: memref<1x128xf32, #tpu.memory_space<vmem>>, %arg10: memref<8x8x128xf32, #tpu.memory_space<vmem>>, %arg11: memref<8x128xf32, #tpu.memory_space<vmem>>, %arg12: memref<8x128xf32, #tpu.memory_space<vmem>>, %arg13: memref<64x512xf32, #tpu.memory_space<vmem>>, %arg14: memref<64x128xf32, #tpu.memory_space<vmem>>) attributes {dimension_semantics = [#tpu.dimension_semantics<parallel>, #tpu.dimension_semantics<arbitrary>], iteration_bounds = array<i64: 1, 1>, scalar_prefetch = 0 : i64, scratch_operands = 4 : i64, tpu.core_type = #tpu.core_type<tc>, window_params = [{transform_indices = @transform_0, window_bounds = array<i64: 8, 8, 128>}, {pipeline_mode = #tpu.pipeline_mode<synchronous>, transform_indices = @transform_1, window_bounds = array<i64: 128, 512>}, {pipeline_mode = #tpu.pipeline_mode<synchronous>, transform_indices = @transform_2, window_bounds = array<i64: 128, 512>}, {pipeline_mode = #tpu.pipeline_mode<synchronous>, transform_indices = @transform_3, window_bounds = array<i64: 1, 512>}, {pipeline_mode = #tpu.pipeline_mode<synchronous>, transform_indices = @transform_4, window_bounds = array<i64: 128, 128>}, {pipeline_mode = #tpu.pipeline_mode<synchronous>, transform_indices = @transform_5, window_bounds = array<i64: 1, 128>}, {pipeline_mode = #tpu.pipeline_mode<synchronous>, transform_indices = @transform_6, window_bounds = array<i64: 128, 128>}, {pipeline_mode = #tpu.pipeline_mode<synchronous>, transform_indices = @transform_7, window_bounds = array<i64: 1, 128>}, {transform_indices = @transform_8, window_bounds = array<i64: 8, 8, 128>}]} {
    %c0_i32 = arith.constant 0 : i32
    %0 = arith.cmpi eq, %arg1, %c0_i32 : i32
    %1 = arith.extui %0 : i1 to i32
    %c0_i32_0 = arith.constant 0 : i32
    %2 = arith.cmpi ne, %1, %c0_i32_0 : i32
    scf.if %2 {
      %cst_115 = arith.constant 0.000000e+00 : f32
      %320 = vector.broadcast %cst_115 : f32 to vector<8x128xf32>
      %c0_116 = arith.constant 0 : index
      %c0_117 = arith.constant 0 : index
      %321 = vector.load %arg11[%c0_116, %c0_117] : memref<8x128xf32, #tpu.memory_space<vmem>>, vector<8x128xf32>
      tpu.vector_store %arg11[%c0_116, %c0_117], %320 {strides = array<i32>} : memref<8x128xf32, #tpu.memory_space<vmem>>, vector<8x128xf32>,
      %cst_118 = arith.constant 0.000000e+00 : f32
      %322 = vector.broadcast %cst_118 : f32 to vector<8x128xf32>
      %c0_119 = arith.constant 0 : index
      %c0_120 = arith.constant 0 : index
      %323 = vector.load %arg12[%c0_119, %c0_120] : memref<8x128xf32, #tpu.memory_space<vmem>>, vector<8x128xf32>
      tpu.vector_store %arg12[%c0_119, %c0_120], %322 {strides = array<i32>} : memref<8x128xf32, #tpu.memory_space<vmem>>, vector<8x128xf32>,
    } else {
    }
    %c0 = arith.constant 0 : index
    %c0_1 = arith.constant 0 : index
    %c0_2 = arith.constant 0 : index
    %3 = vector.load %arg2[%c0, %c0_1, %c0_2] : memref<8x8x128xf32, #tpu.memory_space<vmem>>, vector<8x8x128xf32>
    %4 = vector.shape_cast %3 : vector<8x8x128xf32> to vector<64x128xf32>
    %c0_3 = arith.constant 0 : index
    %c0_4 = arith.constant 0 : index
    %5 = vector.load %arg3[%c0_3, %c0_4] : memref<128x512xf32, #tpu.memory_space<vmem>>, vector<128x512xf32>
    %cst = arith.constant dense<0.000000e+00> : vector<64x512xf32>
    %6 = tpu.matmul %4, %5, %cst {dimension_numbers = #tpu.dot_dimension_numbers<[1], [0], [0], [1], [0, 0, 1, 1], [], []>} : vector<64x128xf32>, vector<128x512xf32>, vector<64x512xf32> -> vector<64x512xf32>
    %c0_5 = arith.constant 0 : index
    %c0_6 = arith.constant 0 : index
    %7 = vector.load %arg5[%c0_5, %c0_6] : memref<1x512xf32, #tpu.memory_space<vmem>>, vector<1x512xf32>
    %8 = vector.broadcast %7 : vector<1x512xf32> to vector<64x512xf32>
    %9 = arith.addf %6, %8 : vector<64x512xf32>
    %c0_7 = arith.constant 0 : index
    %c0_8 = arith.constant 0 : index
    %10 = vector.load %arg13[%c0_7, %c0_8] : memref<64x512xf32, #tpu.memory_space<vmem>>, vector<64x512xf32>
    tpu.vector_store %arg13[%c0_7, %c0_8], %9 {strides = array<i32>} : memref<64x512xf32, #tpu.memory_space<vmem>>, vector<64x512xf32>,
    %c0_9 = arith.constant 0 : index
    %c0_10 = arith.constant 0 : index
    %11 = vector.load %arg11[%c0_9, %c0_10] : memref<8x128xf32, #tpu.memory_space<vmem>>, vector<8x128xf32>
    %c0_11 = arith.constant 0 : index
    %c0_12 = arith.constant 0 : index
    %12 = vector.load %arg12[%c0_11, %c0_12] : memref<8x128xf32, #tpu.memory_space<vmem>>, vector<8x128xf32>
    %c0_i32_13 = arith.constant 0 : i32
    %c8_i32 = arith.constant 8 : i32
    %13 = arith.muli %c0_i32_13, %c8_i32 : i32
    %14 = tpu.assume_multiple %13, 8 : i32
    %c0_i32_14 = arith.constant 0 : i32
    %15 = arith.addi %14, %c0_i32_14 : i32
    %16 = arith.index_cast %15 : i32 to index
    %c0_15 = arith.constant 0 : index
    %17 = vector.load %arg13[%16, %c0_15] : memref<64x512xf32, #tpu.memory_space<vmem>>, vector<8x512xf32>
    %c0_16 = arith.constant 0 : index
    %c0_17 = arith.constant 0 : index
    %18 = vector.load %arg4[%c0_16, %c0_17] : memref<128x512xf32, #tpu.memory_space<vmem>>, vector<128x512xf32>
    %cst_18 = arith.constant dense<0.000000e+00> : vector<8x512xf32>
    %19 = tpu.matmul %11, %18, %cst_18 {dimension_numbers = #tpu.dot_dimension_numbers<[1], [0], [0], [1], [0, 0, 1, 1], [], []>} : vector<8x128xf32>, vector<128x512xf32>, vector<8x512xf32> -> vector<8x512xf32>
    %20 = arith.addf %17, %19 : vector<8x512xf32>
    %21 = vector.extract_strided_slice %20 {offsets = [0, 0], sizes = [8, 128], strides = [1, 1]} : vector<8x512xf32> to vector<8x128xf32>
    %22 = arith.negf %21 : vector<8x128xf32>
    %23 = math.exp %22 : vector<8x128xf32>
    %cst_19 = arith.constant 1.000000e+00 : f32
    %24 = vector.broadcast %cst_19 : f32 to vector<8x128xf32>
    %25 = arith.addf %24, %23 : vector<8x128xf32>
    %26 = arith.divf %24, %25 : vector<8x128xf32>
    %27 = vector.extract_strided_slice %20 {offsets = [0, 128], sizes = [8, 128], strides = [1, 1]} : vector<8x512xf32> to vector<8x128xf32>
    %28 = arith.negf %27 : vector<8x128xf32>
    %29 = math.exp %28 : vector<8x128xf32>
    %cst_20 = arith.constant 1.000000e+00 : f32
    %30 = vector.broadcast %cst_20 : f32 to vector<8x128xf32>
    %31 = arith.addf %30, %29 : vector<8x128xf32>
    %32 = arith.divf %30, %31 : vector<8x128xf32>
    %33 = vector.extract_strided_slice %20 {offsets = [0, 256], sizes = [8, 128], strides = [1, 1]} : vector<8x512xf32> to vector<8x128xf32>
    %34 = math.tanh %33 : vector<8x128xf32>
    %35 = vector.extract_strided_slice %20 {offsets = [0, 384], sizes = [8, 128], strides = [1, 1]} : vector<8x512xf32> to vector<8x128xf32>
    %36 = arith.negf %35 : vector<8x128xf32>
    %37 = math.exp %36 : vector<8x128xf32>
    %cst_21 = arith.constant 1.000000e+00 : f32
    %38 = vector.broadcast %cst_21 : f32 to vector<8x128xf32>
    %39 = arith.addf %38, %37 : vector<8x128xf32>
    %40 = arith.divf %38, %39 : vector<8x128xf32>
    %41 = arith.mulf %32, %12 : vector<8x128xf32>
    %42 = arith.mulf %26, %34 : vector<8x128xf32>
    %43 = arith.addf %41, %42 : vector<8x128xf32>
    %44 = math.tanh %43 : vector<8x128xf32>
    %45 = arith.mulf %40, %44 : vector<8x128xf32>
    %46 = arith.index_cast %15 : i32 to index
    %c0_22 = arith.constant 0 : index
    %47 = vector.load %arg14[%46, %c0_22] : memref<64x128xf32, #tpu.memory_space<vmem>>, vector<8x128xf32>
    tpu.vector_store %arg14[%46, %c0_22], %45 {strides = array<i32>} : memref<64x128xf32, #tpu.memory_space<vmem>>, vector<8x128xf32>,
    %c1_i32 = arith.constant 1 : i32
    %c8_i32_23 = arith.constant 8 : i32
    %48 = arith.muli %c1_i32, %c8_i32_23 : i32
    %49 = tpu.assume_multiple %48, 8 : i32
    %c0_i32_24 = arith.constant 0 : i32
    %50 = arith.addi %49, %c0_i32_24 : i32
    %51 = arith.index_cast %50 : i32 to index
    %c0_25 = arith.constant 0 : index
    %52 = vector.load %arg13[%51, %c0_25] : memref<64x512xf32, #tpu.memory_space<vmem>>, vector<8x512xf32>
    %c0_26 = arith.constant 0 : index
    %c0_27 = arith.constant 0 : index
    %53 = vector.load %arg4[%c0_26, %c0_27] : memref<128x512xf32, #tpu.memory_space<vmem>>, vector<128x512xf32>
    %cst_28 = arith.constant dense<0.000000e+00> : vector<8x512xf32>
    %54 = tpu.matmul %45, %53, %cst_28 {dimension_numbers = #tpu.dot_dimension_numbers<[1], [0], [0], [1], [0, 0, 1, 1], [], []>} : vector<8x128xf32>, vector<128x512xf32>, vector<8x512xf32> -> vector<8x512xf32>
    %55 = arith.addf %52, %54 : vector<8x512xf32>
    %56 = vector.extract_strided_slice %55 {offsets = [0, 0], sizes = [8, 128], strides = [1, 1]} : vector<8x512xf32> to vector<8x128xf32>
    %57 = arith.negf %56 : vector<8x128xf32>
    %58 = math.exp %57 : vector<8x128xf32>
    %cst_29 = arith.constant 1.000000e+00 : f32
    %59 = vector.broadcast %cst_29 : f32 to vector<8x128xf32>
    %60 = arith.addf %59, %58 : vector<8x128xf32>
    %61 = arith.divf %59, %60 : vector<8x128xf32>
    %62 = vector.extract_strided_slice %55 {offsets = [0, 128], sizes = [8, 128], strides = [1, 1]} : vector<8x512xf32> to vector<8x128xf32>
    %63 = arith.negf %62 : vector<8x128xf32>
    %64 = math.exp %63 : vector<8x128xf32>
    %cst_30 = arith.constant 1.000000e+00 : f32
    %65 = vector.broadcast %cst_30 : f32 to vector<8x128xf32>
    %66 = arith.addf %65, %64 : vector<8x128xf32>
    %67 = arith.divf %65, %66 : vector<8x128xf32>
    %68 = vector.extract_strided_slice %55 {offsets = [0, 256], sizes = [8, 128], strides = [1, 1]} : vector<8x512xf32> to vector<8x128xf32>
    %69 = math.tanh %68 : vector<8x128xf32>
    %70 = vector.extract_strided_slice %55 {offsets = [0, 384], sizes = [8, 128], strides = [1, 1]} : vector<8x512xf32> to vector<8x128xf32>
    %71 = arith.negf %70 : vector<8x128xf32>
    %72 = math.exp %71 : vector<8x128xf32>
    %cst_31 = arith.constant 1.000000e+00 : f32
    %73 = vector.broadcast %cst_31 : f32 to vector<8x128xf32>
    %74 = arith.addf %73, %72 : vector<8x128xf32>
    %75 = arith.divf %73, %74 : vector<8x128xf32>
    %76 = arith.mulf %67, %43 : vector<8x128xf32>
    %77 = arith.mulf %61, %69 : vector<8x128xf32>
    %78 = arith.addf %76, %77 : vector<8x128xf32>
    %79 = math.tanh %78 : vector<8x128xf32>
    %80 = arith.mulf %75, %79 : vector<8x128xf32>
    %81 = arith.index_cast %50 : i32 to index
    %c0_32 = arith.constant 0 : index
    %82 = vector.load %arg14[%81, %c0_32] : memref<64x128xf32, #tpu.memory_space<vmem>>, vector<8x128xf32>
    tpu.vector_store %arg14[%81, %c0_32], %80 {strides = array<i32>} : memref<64x128xf32, #tpu.memory_space<vmem>>, vector<8x128xf32>,
    %c2_i32 = arith.constant 2 : i32
    %c8_i32_33 = arith.constant 8 : i32
    %83 = arith.muli %c2_i32, %c8_i32_33 : i32
    %84 = tpu.assume_multiple %83, 8 : i32
    %c0_i32_34 = arith.constant 0 : i32
    %85 = arith.addi %84, %c0_i32_34 : i32
    %86 = arith.index_cast %85 : i32 to index
    %c0_35 = arith.constant 0 : index
    %87 = vector.load %arg13[%86, %c0_35] : memref<64x512xf32, #tpu.memory_space<vmem>>, vector<8x512xf32>
    %c0_36 = arith.constant 0 : index
    %c0_37 = arith.constant 0 : index
    %88 = vector.load %arg4[%c0_36, %c0_37] : memref<128x512xf32, #tpu.memory_space<vmem>>, vector<128x512xf32>
    %cst_38 = arith.constant dense<0.000000e+00> : vector<8x512xf32>
    %89 = tpu.matmul %80, %88, %cst_38 {dimension_numbers = #tpu.dot_dimension_numbers<[1], [0], [0], [1], [0, 0, 1, 1], [], []>} : vector<8x128xf32>, vector<128x512xf32>, vector<8x512xf32> -> vector<8x512xf32>
    %90 = arith.addf %87, %89 : vector<8x512xf32>
    %91 = vector.extract_strided_slice %90 {offsets = [0, 0], sizes = [8, 128], strides = [1, 1]} : vector<8x512xf32> to vector<8x128xf32>
    %92 = arith.negf %91 : vector<8x128xf32>
    %93 = math.exp %92 : vector<8x128xf32>
    %cst_39 = arith.constant 1.000000e+00 : f32
    %94 = vector.broadcast %cst_39 : f32 to vector<8x128xf32>
    %95 = arith.addf %94, %93 : vector<8x128xf32>
    %96 = arith.divf %94, %95 : vector<8x128xf32>
    %97 = vector.extract_strided_slice %90 {offsets = [0, 128], sizes = [8, 128], strides = [1, 1]} : vector<8x512xf32> to vector<8x128xf32>
    %98 = arith.negf %97 : vector<8x128xf32>
    %99 = math.exp %98 : vector<8x128xf32>
    %cst_40 = arith.constant 1.000000e+00 : f32
    %100 = vector.broadcast %cst_40 : f32 to vector<8x128xf32>
    %101 = arith.addf %100, %99 : vector<8x128xf32>
    %102 = arith.divf %100, %101 : vector<8x128xf32>
    %103 = vector.extract_strided_slice %90 {offsets = [0, 256], sizes = [8, 128], strides = [1, 1]} : vector<8x512xf32> to vector<8x128xf32>
    %104 = math.tanh %103 : vector<8x128xf32>
    %105 = vector.extract_strided_slice %90 {offsets = [0, 384], sizes = [8, 128], strides = [1, 1]} : vector<8x512xf32> to vector<8x128xf32>
    %106 = arith.negf %105 : vector<8x128xf32>
    %107 = math.exp %106 : vector<8x128xf32>
    %cst_41 = arith.constant 1.000000e+00 : f32
    %108 = vector.broadcast %cst_41 : f32 to vector<8x128xf32>
    %109 = arith.addf %108, %107 : vector<8x128xf32>
    %110 = arith.divf %108, %109 : vector<8x128xf32>
    %111 = arith.mulf %102, %78 : vector<8x128xf32>
    %112 = arith.mulf %96, %104 : vector<8x128xf32>
    %113 = arith.addf %111, %112 : vector<8x128xf32>
    %114 = math.tanh %113 : vector<8x128xf32>
    %115 = arith.mulf %110, %114 : vector<8x128xf32>
    %116 = arith.index_cast %85 : i32 to index
    %c0_42 = arith.constant 0 : index
    %117 = vector.load %arg14[%116, %c0_42] : memref<64x128xf32, #tpu.memory_space<vmem>>, vector<8x128xf32>
    tpu.vector_store %arg14[%116, %c0_42], %115 {strides = array<i32>} : memref<64x128xf32, #tpu.memory_space<vmem>>, vector<8x128xf32>,
    %c3_i32 = arith.constant 3 : i32
    %c8_i32_43 = arith.constant 8 : i32
    %118 = arith.muli %c3_i32, %c8_i32_43 : i32
    %119 = tpu.assume_multiple %118, 8 : i32
    %c0_i32_44 = arith.constant 0 : i32
    %120 = arith.addi %119, %c0_i32_44 : i32
    %121 = arith.index_cast %120 : i32 to index
    %c0_45 = arith.constant 0 : index
    %122 = vector.load %arg13[%121, %c0_45] : memref<64x512xf32, #tpu.memory_space<vmem>>, vector<8x512xf32>
    %c0_46 = arith.constant 0 : index
    %c0_47 = arith.constant 0 : index
    %123 = vector.load %arg4[%c0_46, %c0_47] : memref<128x512xf32, #tpu.memory_space<vmem>>, vector<128x512xf32>
    %cst_48 = arith.constant dense<0.000000e+00> : vector<8x512xf32>
    %124 = tpu.matmul %115, %123, %cst_48 {dimension_numbers = #tpu.dot_dimension_numbers<[1], [0], [0], [1], [0, 0, 1, 1], [], []>} : vector<8x128xf32>, vector<128x512xf32>, vector<8x512xf32> -> vector<8x512xf32>
    %125 = arith.addf %122, %124 : vector<8x512xf32>
    %126 = vector.extract_strided_slice %125 {offsets = [0, 0], sizes = [8, 128], strides = [1, 1]} : vector<8x512xf32> to vector<8x128xf32>
    %127 = arith.negf %126 : vector<8x128xf32>
    %128 = math.exp %127 : vector<8x128xf32>
    %cst_49 = arith.constant 1.000000e+00 : f32
    %129 = vector.broadcast %cst_49 : f32 to vector<8x128xf32>
    %130 = arith.addf %129, %128 : vector<8x128xf32>
    %131 = arith.divf %129, %130 : vector<8x128xf32>
    %132 = vector.extract_strided_slice %125 {offsets = [0, 128], sizes = [8, 128], strides = [1, 1]} : vector<8x512xf32> to vector<8x128xf32>
    %133 = arith.negf %132 : vector<8x128xf32>
    %134 = math.exp %133 : vector<8x128xf32>
    %cst_50 = arith.constant 1.000000e+00 : f32
    %135 = vector.broadcast %cst_50 : f32 to vector<8x128xf32>
    %136 = arith.addf %135, %134 : vector<8x128xf32>
    %137 = arith.divf %135, %136 : vector<8x128xf32>
    %138 = vector.extract_strided_slice %125 {offsets = [0, 256], sizes = [8, 128], strides = [1, 1]} : vector<8x512xf32> to vector<8x128xf32>
    %139 = math.tanh %138 : vector<8x128xf32>
    %140 = vector.extract_strided_slice %125 {offsets = [0, 384], sizes = [8, 128], strides = [1, 1]} : vector<8x512xf32> to vector<8x128xf32>
    %141 = arith.negf %140 : vector<8x128xf32>
    %142 = math.exp %141 : vector<8x128xf32>
    %cst_51 = arith.constant 1.000000e+00 : f32
    %143 = vector.broadcast %cst_51 : f32 to vector<8x128xf32>
    %144 = arith.addf %143, %142 : vector<8x128xf32>
    %145 = arith.divf %143, %144 : vector<8x128xf32>
    %146 = arith.mulf %137, %113 : vector<8x128xf32>
    %147 = arith.mulf %131, %139 : vector<8x128xf32>
    %148 = arith.addf %146, %147 : vector<8x128xf32>
    %149 = math.tanh %148 : vector<8x128xf32>
    %150 = arith.mulf %145, %149 : vector<8x128xf32>
    %151 = arith.index_cast %120 : i32 to index
    %c0_52 = arith.constant 0 : index
    %152 = vector.load %arg14[%151, %c0_52] : memref<64x128xf32, #tpu.memory_space<vmem>>, vector<8x128xf32>
    tpu.vector_store %arg14[%151, %c0_52], %150 {strides = array<i32>} : memref<64x128xf32, #tpu.memory_space<vmem>>, vector<8x128xf32>,
    %c4_i32 = arith.constant 4 : i32
    %c8_i32_53 = arith.constant 8 : i32
    %153 = arith.muli %c4_i32, %c8_i32_53 : i32
    %154 = tpu.assume_multiple %153, 8 : i32
    %c0_i32_54 = arith.constant 0 : i32
    %155 = arith.addi %154, %c0_i32_54 : i32
    %156 = arith.index_cast %155 : i32 to index
    %c0_55 = arith.constant 0 : index
    %157 = vector.load %arg13[%156, %c0_55] : memref<64x512xf32, #tpu.memory_space<vmem>>, vector<8x512xf32>
    %c0_56 = arith.constant 0 : index
    %c0_57 = arith.constant 0 : index
    %158 = vector.load %arg4[%c0_56, %c0_57] : memref<128x512xf32, #tpu.memory_space<vmem>>, vector<128x512xf32>
    %cst_58 = arith.constant dense<0.000000e+00> : vector<8x512xf32>
    %159 = tpu.matmul %150, %158, %cst_58 {dimension_numbers = #tpu.dot_dimension_numbers<[1], [0], [0], [1], [0, 0, 1, 1], [], []>} : vector<8x128xf32>, vector<128x512xf32>, vector<8x512xf32> -> vector<8x512xf32>
    %160 = arith.addf %157, %159 : vector<8x512xf32>
    %161 = vector.extract_strided_slice %160 {offsets = [0, 0], sizes = [8, 128], strides = [1, 1]} : vector<8x512xf32> to vector<8x128xf32>
    %162 = arith.negf %161 : vector<8x128xf32>
    %163 = math.exp %162 : vector<8x128xf32>
    %cst_59 = arith.constant 1.000000e+00 : f32
    %164 = vector.broadcast %cst_59 : f32 to vector<8x128xf32>
    %165 = arith.addf %164, %163 : vector<8x128xf32>
    %166 = arith.divf %164, %165 : vector<8x128xf32>
    %167 = vector.extract_strided_slice %160 {offsets = [0, 128], sizes = [8, 128], strides = [1, 1]} : vector<8x512xf32> to vector<8x128xf32>
    %168 = arith.negf %167 : vector<8x128xf32>
    %169 = math.exp %168 : vector<8x128xf32>
    %cst_60 = arith.constant 1.000000e+00 : f32
    %170 = vector.broadcast %cst_60 : f32 to vector<8x128xf32>
    %171 = arith.addf %170, %169 : vector<8x128xf32>
    %172 = arith.divf %170, %171 : vector<8x128xf32>
    %173 = vector.extract_strided_slice %160 {offsets = [0, 256], sizes = [8, 128], strides = [1, 1]} : vector<8x512xf32> to vector<8x128xf32>
    %174 = math.tanh %173 : vector<8x128xf32>
    %175 = vector.extract_strided_slice %160 {offsets = [0, 384], sizes = [8, 128], strides = [1, 1]} : vector<8x512xf32> to vector<8x128xf32>
    %176 = arith.negf %175 : vector<8x128xf32>
    %177 = math.exp %176 : vector<8x128xf32>
    %cst_61 = arith.constant 1.000000e+00 : f32
    %178 = vector.broadcast %cst_61 : f32 to vector<8x128xf32>
    %179 = arith.addf %178, %177 : vector<8x128xf32>
    %180 = arith.divf %178, %179 : vector<8x128xf32>
    %181 = arith.mulf %172, %148 : vector<8x128xf32>
    %182 = arith.mulf %166, %174 : vector<8x128xf32>
    %183 = arith.addf %181, %182 : vector<8x128xf32>
    %184 = math.tanh %183 : vector<8x128xf32>
    %185 = arith.mulf %180, %184 : vector<8x128xf32>
    %186 = arith.index_cast %155 : i32 to index
    %c0_62 = arith.constant 0 : index
    %187 = vector.load %arg14[%186, %c0_62] : memref<64x128xf32, #tpu.memory_space<vmem>>, vector<8x128xf32>
    tpu.vector_store %arg14[%186, %c0_62], %185 {strides = array<i32>} : memref<64x128xf32, #tpu.memory_space<vmem>>, vector<8x128xf32>,
    %c5_i32 = arith.constant 5 : i32
    %c8_i32_63 = arith.constant 8 : i32
    %188 = arith.muli %c5_i32, %c8_i32_63 : i32
    %189 = tpu.assume_multiple %188, 8 : i32
    %c0_i32_64 = arith.constant 0 : i32
    %190 = arith.addi %189, %c0_i32_64 : i32
    %191 = arith.index_cast %190 : i32 to index
    %c0_65 = arith.constant 0 : index
    %192 = vector.load %arg13[%191, %c0_65] : memref<64x512xf32, #tpu.memory_space<vmem>>, vector<8x512xf32>
    %c0_66 = arith.constant 0 : index
    %c0_67 = arith.constant 0 : index
    %193 = vector.load %arg4[%c0_66, %c0_67] : memref<128x512xf32, #tpu.memory_space<vmem>>, vector<128x512xf32>
    %cst_68 = arith.constant dense<0.000000e+00> : vector<8x512xf32>
    %194 = tpu.matmul %185, %193, %cst_68 {dimension_numbers = #tpu.dot_dimension_numbers<[1], [0], [0], [1], [0, 0, 1, 1], [], []>} : vector<8x128xf32>, vector<128x512xf32>, vector<8x512xf32> -> vector<8x512xf32>
    %195 = arith.addf %192, %194 : vector<8x512xf32>
    %196 = vector.extract_strided_slice %195 {offsets = [0, 0], sizes = [8, 128], strides = [1, 1]} : vector<8x512xf32> to vector<8x128xf32>
    %197 = arith.negf %196 : vector<8x128xf32>
    %198 = math.exp %197 : vector<8x128xf32>
    %cst_69 = arith.constant 1.000000e+00 : f32
    %199 = vector.broadcast %cst_69 : f32 to vector<8x128xf32>
    %200 = arith.addf %199, %198 : vector<8x128xf32>
    %201 = arith.divf %199, %200 : vector<8x128xf32>
    %202 = vector.extract_strided_slice %195 {offsets = [0, 128], sizes = [8, 128], strides = [1, 1]} : vector<8x512xf32> to vector<8x128xf32>
    %203 = arith.negf %202 : vector<8x128xf32>
    %204 = math.exp %203 : vector<8x128xf32>
    %cst_70 = arith.constant 1.000000e+00 : f32
    %205 = vector.broadcast %cst_70 : f32 to vector<8x128xf32>
    %206 = arith.addf %205, %204 : vector<8x128xf32>
    %207 = arith.divf %205, %206 : vector<8x128xf32>
    %208 = vector.extract_strided_slice %195 {offsets = [0, 256], sizes = [8, 128], strides = [1, 1]} : vector<8x512xf32> to vector<8x128xf32>
    %209 = math.tanh %208 : vector<8x128xf32>
    %210 = vector.extract_strided_slice %195 {offsets = [0, 384], sizes = [8, 128], strides = [1, 1]} : vector<8x512xf32> to vector<8x128xf32>
    %211 = arith.negf %210 : vector<8x128xf32>
    %212 = math.exp %211 : vector<8x128xf32>
    %cst_71 = arith.constant 1.000000e+00 : f32
    %213 = vector.broadcast %cst_71 : f32 to vector<8x128xf32>
    %214 = arith.addf %213, %212 : vector<8x128xf32>
    %215 = arith.divf %213, %214 : vector<8x128xf32>
    %216 = arith.mulf %207, %183 : vector<8x128xf32>
    %217 = arith.mulf %201, %209 : vector<8x128xf32>
    %218 = arith.addf %216, %217 : vector<8x128xf32>
    %219 = math.tanh %218 : vector<8x128xf32>
    %220 = arith.mulf %215, %219 : vector<8x128xf32>
    %221 = arith.index_cast %190 : i32 to index
    %c0_72 = arith.constant 0 : index
    %222 = vector.load %arg14[%221, %c0_72] : memref<64x128xf32, #tpu.memory_space<vmem>>, vector<8x128xf32>
    tpu.vector_store %arg14[%221, %c0_72], %220 {strides = array<i32>} : memref<64x128xf32, #tpu.memory_space<vmem>>, vector<8x128xf32>,
    %c6_i32 = arith.constant 6 : i32
    %c8_i32_73 = arith.constant 8 : i32
    %223 = arith.muli %c6_i32, %c8_i32_73 : i32
    %224 = tpu.assume_multiple %223, 8 : i32
    %c0_i32_74 = arith.constant 0 : i32
    %225 = arith.addi %224, %c0_i32_74 : i32
    %226 = arith.index_cast %225 : i32 to index
    %c0_75 = arith.constant 0 : index
    %227 = vector.load %arg13[%226, %c0_75] : memref<64x512xf32, #tpu.memory_space<vmem>>, vector<8x512xf32>
    %c0_76 = arith.constant 0 : index
    %c0_77 = arith.constant 0 : index
    %228 = vector.load %arg4[%c0_76, %c0_77] : memref<128x512xf32, #tpu.memory_space<vmem>>, vector<128x512xf32>
    %cst_78 = arith.constant dense<0.000000e+00> : vector<8x512xf32>
    %229 = tpu.matmul %220, %228, %cst_78 {dimension_numbers = #tpu.dot_dimension_numbers<[1], [0], [0], [1], [0, 0, 1, 1], [], []>} : vector<8x128xf32>, vector<128x512xf32>, vector<8x512xf32> -> vector<8x512xf32>
    %230 = arith.addf %227, %229 : vector<8x512xf32>
    %231 = vector.extract_strided_slice %230 {offsets = [0, 0], sizes = [8, 128], strides = [1, 1]} : vector<8x512xf32> to vector<8x128xf32>
    %232 = arith.negf %231 : vector<8x128xf32>
    %233 = math.exp %232 : vector<8x128xf32>
    %cst_79 = arith.constant 1.000000e+00 : f32
    %234 = vector.broadcast %cst_79 : f32 to vector<8x128xf32>
    %235 = arith.addf %234, %233 : vector<8x128xf32>
    %236 = arith.divf %234, %235 : vector<8x128xf32>
    %237 = vector.extract_strided_slice %230 {offsets = [0, 128], sizes = [8, 128], strides = [1, 1]} : vector<8x512xf32> to vector<8x128xf32>
    %238 = arith.negf %237 : vector<8x128xf32>
    %239 = math.exp %238 : vector<8x128xf32>
    %cst_80 = arith.constant 1.000000e+00 : f32
    %240 = vector.broadcast %cst_80 : f32 to vector<8x128xf32>
    %241 = arith.addf %240, %239 : vector<8x128xf32>
    %242 = arith.divf %240, %241 : vector<8x128xf32>
    %243 = vector.extract_strided_slice %230 {offsets = [0, 256], sizes = [8, 128], strides = [1, 1]} : vector<8x512xf32> to vector<8x128xf32>
    %244 = math.tanh %243 : vector<8x128xf32>
    %245 = vector.extract_strided_slice %230 {offsets = [0, 384], sizes = [8, 128], strides = [1, 1]} : vector<8x512xf32> to vector<8x128xf32>
    %246 = arith.negf %245 : vector<8x128xf32>
    %247 = math.exp %246 : vector<8x128xf32>
    %cst_81 = arith.constant 1.000000e+00 : f32
    %248 = vector.broadcast %cst_81 : f32 to vector<8x128xf32>
    %249 = arith.addf %248, %247 : vector<8x128xf32>
    %250 = arith.divf %248, %249 : vector<8x128xf32>
    %251 = arith.mulf %242, %218 : vector<8x128xf32>
    %252 = arith.mulf %236, %244 : vector<8x128xf32>
    %253 = arith.addf %251, %252 : vector<8x128xf32>
    %254 = math.tanh %253 : vector<8x128xf32>
    %255 = arith.mulf %250, %254 : vector<8x128xf32>
    %256 = arith.index_cast %225 : i32 to index
    %c0_82 = arith.constant 0 : index
    %257 = vector.load %arg14[%256, %c0_82] : memref<64x128xf32, #tpu.memory_space<vmem>>, vector<8x128xf32>
    tpu.vector_store %arg14[%256, %c0_82], %255 {strides = array<i32>} : memref<64x128xf32, #tpu.memory_space<vmem>>, vector<8x128xf32>,
    %c7_i32 = arith.constant 7 : i32
    %c8_i32_83 = arith.constant 8 : i32
    %258 = arith.muli %c7_i32, %c8_i32_83 : i32
    %259 = tpu.assume_multiple %258, 8 : i32
    %c0_i32_84 = arith.constant 0 : i32
    %260 = arith.addi %259, %c0_i32_84 : i32
    %261 = arith.index_cast %260 : i32 to index
    %c0_85 = arith.constant 0 : index
    %262 = vector.load %arg13[%261, %c0_85] : memref<64x512xf32, #tpu.memory_space<vmem>>, vector<8x512xf32>
    %c0_86 = arith.constant 0 : index
    %c0_87 = arith.constant 0 : index
    %263 = vector.load %arg4[%c0_86, %c0_87] : memref<128x512xf32, #tpu.memory_space<vmem>>, vector<128x512xf32>
    %cst_88 = arith.constant dense<0.000000e+00> : vector<8x512xf32>
    %264 = tpu.matmul %255, %263, %cst_88 {dimension_numbers = #tpu.dot_dimension_numbers<[1], [0], [0], [1], [0, 0, 1, 1], [], []>} : vector<8x128xf32>, vector<128x512xf32>, vector<8x512xf32> -> vector<8x512xf32>
    %265 = arith.addf %262, %264 : vector<8x512xf32>
    %266 = vector.extract_strided_slice %265 {offsets = [0, 0], sizes = [8, 128], strides = [1, 1]} : vector<8x512xf32> to vector<8x128xf32>
    %267 = arith.negf %266 : vector<8x128xf32>
    %268 = math.exp %267 : vector<8x128xf32>
    %cst_89 = arith.constant 1.000000e+00 : f32
    %269 = vector.broadcast %cst_89 : f32 to vector<8x128xf32>
    %270 = arith.addf %269, %268 : vector<8x128xf32>
    %271 = arith.divf %269, %270 : vector<8x128xf32>
    %272 = vector.extract_strided_slice %265 {offsets = [0, 128], sizes = [8, 128], strides = [1, 1]} : vector<8x512xf32> to vector<8x128xf32>
    %273 = arith.negf %272 : vector<8x128xf32>
    %274 = math.exp %273 : vector<8x128xf32>
    %cst_90 = arith.constant 1.000000e+00 : f32
    %275 = vector.broadcast %cst_90 : f32 to vector<8x128xf32>
    %276 = arith.addf %275, %274 : vector<8x128xf32>
    %277 = arith.divf %275, %276 : vector<8x128xf32>
    %278 = vector.extract_strided_slice %265 {offsets = [0, 256], sizes = [8, 128], strides = [1, 1]} : vector<8x512xf32> to vector<8x128xf32>
    %279 = math.tanh %278 : vector<8x128xf32>
    %280 = vector.extract_strided_slice %265 {offsets = [0, 384], sizes = [8, 128], strides = [1, 1]} : vector<8x512xf32> to vector<8x128xf32>
    %281 = arith.negf %280 : vector<8x128xf32>
    %282 = math.exp %281 : vector<8x128xf32>
    %cst_91 = arith.constant 1.000000e+00 : f32
    %283 = vector.broadcast %cst_91 : f32 to vector<8x128xf32>
    %284 = arith.addf %283, %282 : vector<8x128xf32>
    %285 = arith.divf %283, %284 : vector<8x128xf32>
    %286 = arith.mulf %277, %253 : vector<8x128xf32>
    %287 = arith.mulf %271, %279 : vector<8x128xf32>
    %288 = arith.addf %286, %287 : vector<8x128xf32>
    %289 = math.tanh %288 : vector<8x128xf32>
    %290 = arith.mulf %285, %289 : vector<8x128xf32>
    %291 = arith.index_cast %260 : i32 to index
    %c0_92 = arith.constant 0 : index
    %292 = vector.load %arg14[%291, %c0_92] : memref<64x128xf32, #tpu.memory_space<vmem>>, vector<8x128xf32>
    tpu.vector_store %arg14[%291, %c0_92], %290 {strides = array<i32>} : memref<64x128xf32, #tpu.memory_space<vmem>>, vector<8x128xf32>,
    %c8_i32_93 = arith.constant 8 : i32
    %c0_94 = arith.constant 0 : index
    %c0_95 = arith.constant 0 : index
    %293 = vector.load %arg11[%c0_94, %c0_95] : memref<8x128xf32, #tpu.memory_space<vmem>>, vector<8x128xf32>
    tpu.vector_store %arg11[%c0_94, %c0_95], %290 {strides = array<i32>} : memref<8x128xf32, #tpu.memory_space<vmem>>, vector<8x128xf32>,
    %c0_96 = arith.constant 0 : index
    %c0_97 = arith.constant 0 : index
    %294 = vector.load %arg12[%c0_96, %c0_97] : memref<8x128xf32, #tpu.memory_space<vmem>>, vector<8x128xf32>
    tpu.vector_store %arg12[%c0_96, %c0_97], %288 {strides = array<i32>} : memref<8x128xf32, #tpu.memory_space<vmem>>, vector<8x128xf32>,
    %c0_98 = arith.constant 0 : index
    %c0_99 = arith.constant 0 : index
    %295 = vector.load %arg14[%c0_98, %c0_99] : memref<64x128xf32, #tpu.memory_space<vmem>>, vector<64x128xf32>
    %c0_100 = arith.constant 0 : index
    %c0_101 = arith.constant 0 : index
    %296 = vector.load %arg6[%c0_100, %c0_101] : memref<128x128xf32, #tpu.memory_space<vmem>>, vector<128x128xf32>
    %cst_102 = arith.constant dense<0.000000e+00> : vector<64x128xf32>
    %297 = tpu.matmul %295, %296, %cst_102 {dimension_numbers = #tpu.dot_dimension_numbers<[1], [0], [0], [1], [0, 0, 1, 1], [], []>} : vector<64x128xf32>, vector<128x128xf32>, vector<64x128xf32> -> vector<64x128xf32>
    %c0_103 = arith.constant 0 : index
    %c0_104 = arith.constant 0 : index
    %298 = vector.load %arg7[%c0_103, %c0_104] : memref<1x128xf32, #tpu.memory_space<vmem>>, vector<1x128xf32>
    %299 = vector.broadcast %298 : vector<1x128xf32> to vector<64x128xf32>
    %300 = arith.addf %297, %299 : vector<64x128xf32>
    %301 = math.tanh %300 : vector<64x128xf32>
    %c0_105 = arith.constant 0 : index
    %c0_106 = arith.constant 0 : index
    %302 = vector.load %arg8[%c0_105, %c0_106] : memref<128x128xf32, #tpu.memory_space<vmem>>, vector<128x128xf32>
    %cst_107 = arith.constant dense<0.000000e+00> : vector<64x128xf32>
    %303 = tpu.matmul %301, %302, %cst_107 {dimension_numbers = #tpu.dot_dimension_numbers<[1], [0], [0], [1], [0, 0, 1, 1], [], []>} : vector<64x128xf32>, vector<128x128xf32>, vector<64x128xf32> -> vector<64x128xf32>
    %c0_108 = arith.constant 0 : index
    %c0_109 = arith.constant 0 : index
    %304 = vector.load %arg9[%c0_108, %c0_109] : memref<1x128xf32, #tpu.memory_space<vmem>>, vector<1x128xf32>
    %305 = vector.broadcast %304 : vector<1x128xf32> to vector<64x128xf32>
    %306 = arith.addf %303, %305 : vector<64x128xf32>
    %cst_110 = arith.constant dense<0xFF800000> : vector<64xf32>
    %307 = vector.multi_reduction <maximumf>, %306, %cst_110 [1] : vector<64x128xf32> to vector<64xf32>
    %308 = vector.shape_cast %307 : vector<64xf32> to vector<64x1xf32>
    %309 = vector.broadcast %308 : vector<64x1xf32> to vector<64x128xf32>
    %310 = arith.subf %306, %309 : vector<64x128xf32>
    %311 = math.exp %310 : vector<64x128xf32>
    %cst_111 = arith.constant dense<0.000000e+00> : vector<64xf32>
    %312 = vector.multi_reduction <add>, %311, %cst_111 [1] : vector<64x128xf32> to vector<64xf32>
    %313 = vector.shape_cast %312 : vector<64xf32> to vector<64x1xf32>
    %314 = math.log %313 : vector<64x1xf32>
    %315 = arith.addf %308, %314 : vector<64x1xf32>
    %316 = vector.broadcast %315 : vector<64x1xf32> to vector<64x128xf32>
    %317 = arith.subf %306, %316 : vector<64x128xf32>
    %318 = vector.shape_cast %317 : vector<64x128xf32> to vector<8x8x128xf32>
    %c0_112 = arith.constant 0 : index
    %c0_113 = arith.constant 0 : index
    %c0_114 = arith.constant 0 : index
    %319 = vector.load %arg10[%c0_112, %c0_113, %c0_114] : memref<8x8x128xf32, #tpu.memory_space<vmem>>, vector<8x8x128xf32>
    tpu.vector_store %arg10[%c0_112, %c0_113, %c0_114], %318 {strides = array<i32>} : memref<8x8x128xf32, #tpu.memory_space<vmem>>, vector<8x8x128xf32>,
    return
  }
  func.func @transform_0(%arg0: i32, %arg1: i32) -> (i32, i32, i32) {
    %c0_i32 = arith.constant 0 : i32
    %c0_i32_0 = arith.constant 0 : i32
    return %arg1, %arg0, %c0_i32 : i32, i32, i32
  }
  func.func @transform_1(%arg0: i32, %arg1: i32) -> (i32, i32) {
    %c0_i32 = arith.constant 0 : i32
    %c0_i32_0 = arith.constant 0 : i32
    %c0_i32_1 = arith.constant 0 : i32
    return %c0_i32, %c0_i32_0 : i32, i32
  }
  func.func @transform_2(%arg0: i32, %arg1: i32) -> (i32, i32) {
    %c0_i32 = arith.constant 0 : i32
    %c0_i32_0 = arith.constant 0 : i32
    %c0_i32_1 = arith.constant 0 : i32
    return %c0_i32, %c0_i32_0 : i32, i32
  }
  func.func @transform_3(%arg0: i32, %arg1: i32) -> (i32, i32) {
    %c0_i32 = arith.constant 0 : i32
    %c0_i32_0 = arith.constant 0 : i32
    %c0_i32_1 = arith.constant 0 : i32
    return %c0_i32, %c0_i32_0 : i32, i32
  }
  func.func @transform_4(%arg0: i32, %arg1: i32) -> (i32, i32) {
    %c0_i32 = arith.constant 0 : i32
    %c0_i32_0 = arith.constant 0 : i32
    %c0_i32_1 = arith.constant 0 : i32
    return %c0_i32, %c0_i32_0 : i32, i32
  }
  func.func @transform_5(%arg0: i32, %arg1: i32) -> (i32, i32) {
    %c0_i32 = arith.constant 0 : i32
    %c0_i32_0 = arith.constant 0 : i32
    %c0_i32_1 = arith.constant 0 : i32
    return %c0_i32, %c0_i32_0 : i32, i32
  }
  func.func @transform_6(%arg0: i32, %arg1: i32) -> (i32, i32) {
    %c0_i32 = arith.constant 0 : i32
    %c0_i32_0 = arith.constant 0 : i32
    %c0_i32_1 = arith.constant 0 : i32
    return %c0_i32, %c0_i32_0 : i32, i32
  }
  func.func @transform_7(%arg0: i32, %arg1: i32) -> (i32, i32) {
    %c0_i32 = arith.constant 0 : i32
    %c0_i32_0 = arith.constant 0 : i32
    %c0_i32_1 = arith.constant 0 : i32
    return %c0_i32, %c0_i32_0 : i32, i32
  }
  func.func @transform_8(%arg0: i32, %arg1: i32) -> (i32, i32, i32) {
    %c0_i32 = arith.constant 0 : i32
    %c0_i32_0 = arith.constant 0 : i32
    return %arg1, %arg0, %c0_i32 : i32, i32, i32
  }
}

</mosaic_0001>

<bundles_post_ra>
// kernel: stacked_rnn_forward.1
= control target key start
LH: loop header
LB: loop body
LE: loop exit
PB: predicated region body
PF: predicated region fallthrough
CT: control target
= control target key end

     0   :  { %v3756_v3 = vmov 0.0   ;;  %s5155_s1 = inlined_call_operand.vmem [shape: f32[128,512], index: 1, kind: input, shape index: {}]   ;;  %s5156_s2 = inlined_call_operand.vmem [shape: f32[128,512], index: 2, kind: input, shape index: {}]   ;;  %s5157_s0 = inlined_call_operand.vmem [shape: f32[8,8,128], index: 0, kind: input, shape index: {}]   ;;  %s5158_s3 = inlined_call_operand.vmem [shape: f32[1,512], index: 3, kind: input, shape index: {}]   ;;  %s5159_s4 = inlined_call_operand.vmem [shape: f32[128,128], index: 4, kind: input, shape index: {}]   ;;  %s5160_s6 = inlined_call_operand.vmem [shape: f32[128,128], index: 6, kind: input, shape index: {}]   ;;  %s5161_s5 = inlined_call_operand.vmem [shape: f32[1,128], index: 5, kind: input, shape index: {}]   ;;  %s5162_s7 = inlined_call_operand.vmem [shape: f32[1,128], index: 7, kind: input, shape index: {}]   ;;  %s5163_s8 = inlined_call_operand.vmem [shape: f32[8,8,128], index: 8, kind: output, shape index: {}]  }
   0x1   :  { %v44_v0 = vld [vmem:[%s5155_s1 + $0x8] sm:$0xff]  ;;  %v46_v2 = vld [vmem:[%s5155_s1 + $0x18] sm:$0xff]  ;;  %193 = vmatprep.mubr.f32.mxu0 %v3756_v3  ;;  %306 = vmatprep.mubr.f32.mxu1 %v3756_v3  ;;  %v43_v6 = vld [vmem:[%s5155_s1] sm:$0xff] }
   0x2   :  { %v48_v1 = vld [vmem:[%s5155_s1 + $0x28] sm:$0xff]  ;;  %v50_v5 = vld [vmem:[%s5155_s1 + $0x38] sm:$0xff]  ;;  %v47_v7 = vld [vmem:[%s5155_s1 + $0x20] sm:$0xff] }
   0x3   :  { %v2875_v4 = vpack.c.bf16 %v48_v1, %v44_v0  ;;  %v2907_v8 = vpack.c.bf16 %v50_v5, %v46_v2  ;;  %v2877_v9 = vpack.c.bf16 %v47_v7, %v43_v6  ;;  %v45_v10 = vld [vmem:[%s5155_s1 + $0x10] sm:$0xff]  ;;  %v52_v12 = vld [vmem:[%s5155_s1 + $0x48] sm:$0xff]  ;;  %v54_v15 = vld [vmem:[%s5155_s1 + $0x58] sm:$0xff] }
   0x4   :  { %v49_v11 = vld [vmem:[%s5155_s1 + $0x30] sm:$0xff]  ;;  %v56_v14 = vld [vmem:[%s5155_s1 + $0x68] sm:$0xff]  ;;  %v58_v16 = vld [vmem:[%s5155_s1 + $0x78] sm:$0xff] }
   0x5   :  { %2876 = vmatprep.subr.bf16.mxu0 %v2875_v4  ;;  %v2909_v13 = vpack.c.bf16 %v49_v11, %v45_v10  ;;  %2908 = vmatprep.subr.bf16.mxu1 %v2907_v8  ;;  %v2879_v17 = vpack.c.bf16 %v56_v14, %v52_v12  ;;  %v2911_v18 = vpack.c.bf16 %v58_v16, %v54_v15  ;;  %v51_v19 = vld [vmem:[%s5155_s1 + $0x40] sm:$0xff]  ;;  %v53_v21 = vld [vmem:[%s5155_s1 + $0x50] sm:$0xff]  ;;  %v60_v24 = vld [vmem:[%s5155_s1 + $0x88] sm:$0xff] }
   0x6   :  { %2878 = vmatpush1.bf16.msra.mxu0 %v2877_v9  ;;  %v55_v20 = vld [vmem:[%s5155_s1 + $0x60] sm:$0xff]  ;;  %v57_v23 = vld [vmem:[%s5155_s1 + $0x70] sm:$0xff]  ;;  %v64_v25 = vld [vmem:[%s5155_s1 + $0xa8] sm:$0xff] }
   0x7   :  { %2910 = vmatpush1.bf16.msra.mxu1 %v2909_v13  ;;  %v2881_v22 = vpack.c.bf16 %v55_v20, %v51_v19  ;;  %2880 = vmatprep.subr.bf16.mxu0 %v2879_v17  ;;  %v2913_v26 = vpack.c.bf16 %v57_v23, %v53_v21  ;;  %v2883_v27 = vpack.c.bf16 %v64_v25, %v60_v24  ;;  %v62_v28 = vld [vmem:[%s5155_s1 + $0x98] sm:$0xff]  ;;  %v59_v30 = vld [vmem:[%s5155_s1 + $0x80] sm:$0xff]  ;;  %v61_v33 = vld [vmem:[%s5155_s1 + $0x90] sm:$0xff] }
   0x8   :  { %2912 = vmatprep.subr.bf16.mxu1 %v2911_v18  ;;  %v66_v29 = vld [vmem:[%s5155_s1 + $0xb8] sm:$0xff]  ;;  %v63_v32 = vld [vmem:[%s5155_s1 + $0xa0] sm:$0xff]  ;;  %v65_v34 = vld [vmem:[%s5155_s1 + $0xb0] sm:$0xff] }
   0x9   :  { %v2915_v31 = vpack.c.bf16 %v66_v29, %v62_v28  ;;  %v2885_v35 = vpack.c.bf16 %v63_v32, %v59_v30  ;;  %v68_v36 = vld [vmem:[%s5155_s1 + $0xc8] sm:$0xff]  ;;  %v70_v38 = vld [vmem:[%s5155_s1 + $0xd8] sm:$0xff]  ;;  %v2917_v39 = vpack.c.bf16 %v65_v34, %v61_v33  ;;  %v67_v42 = vld [vmem:[%s5155_s1 + $0xc0] sm:$0xff] }
   0xa   :  { %2882 = vmatpush1.bf16.msra.mxu0 %v2881_v22  ;;  %v72_v37 = vld [vmem:[%s5155_s1 + $0xe8] sm:$0xff]  ;;  %v74_v41 = vld [vmem:[%s5155_s1 + $0xf8] sm:$0xff]  ;;  %v71_v43 = vld [vmem:[%s5155_s1 + $0xe0] sm:$0xff] }
   0xb   :  { %2914 = vmatpush1.bf16.msra.mxu1 %v2913_v26  ;;  %2884 = vmatprep.subr.bf16.mxu0 %v2883_v27  ;;  %v2887_v40 = vpack.c.bf16 %v72_v37, %v68_v36  ;;  %v2919_v44 = vpack.c.bf16 %v74_v41, %v70_v38  ;;  %v69_v45 = vld [vmem:[%s5155_s1 + $0xd0] sm:$0xff]  ;;  %v76_v47 = vld [vmem:[%s5155_s1 + $0x108] sm:$0xff]  ;;  %v78_v49 = vld [vmem:[%s5155_s1 + $0x118] sm:$0xff]  ;;  %v2889_v51 = vpack.c.bf16 %v71_v43, %v67_v42 }
   0xc   :  { %2916 = vmatprep.subr.bf16.mxu1 %v2915_v31  ;;  %v73_v46 = vld [vmem:[%s5155_s1 + $0xf0] sm:$0xff]  ;;  %v80_v48 = vld [vmem:[%s5155_s1 + $0x128] sm:$0xff]  ;;  %v82_v50 = vld [vmem:[%s5155_s1 + $0x138] sm:$0xff] }
   0xd   :  { %v2921_v52 = vpack.c.bf16 %v73_v46, %v69_v45  ;;  %v2891_v53 = vpack.c.bf16 %v80_v48, %v76_v47  ;;  %v75_v54 = vld [vmem:[%s5155_s1 + $0x100] sm:$0xff]  ;;  %v77_v56 = vld [vmem:[%s5155_s1 + $0x110] sm:$0xff]  ;;  %v2923_v57 = vpack.c.bf16 %v82_v50, %v78_v49  ;;  %v84_v59 = vld [vmem:[%s5155_s1 + $0x148] sm:$0xff] }
   0xe   :  { %2886 = vmatpush1.bf16.msra.mxu0 %v2885_v35  ;;  %v79_v55 = vld [vmem:[%s5155_s1 + $0x120] sm:$0xff]  ;;  %v81_v58 = vld [vmem:[%s5155_s1 + $0x130] sm:$0xff]  ;;  %v88_v60 = vld [vmem:[%s5155_s1 + $0x168] sm:$0xff] }
   0xf   :  { %2918 = vmatpush1.bf16.msra.mxu1 %v2917_v39  ;;  %2888 = vmatprep.subr.bf16.mxu0 %v2887_v40  ;;  %v86_v61 = vld [vmem:[%s5155_s1 + $0x158] sm:$0xff]  ;;  %v2893_v63 = vpack.c.bf16 %v79_v55, %v75_v54  ;;  %v2925_v0 = vpack.c.bf16 %v81_v58, %v77_v56  ;;  %v2895_v1 = vpack.c.bf16 %v88_v60, %v84_v59  ;;  %v83_v2 = vld [vmem:[%s5155_s1 + $0x140] sm:$0xff]  ;;  %v85_v5 = vld [vmem:[%s5155_s1 + $0x150] sm:$0xff] }
  0x10   :  { %2920 = vmatprep.subr.bf16.mxu1 %v2919_v44  ;;  %v90_v62 = vld [vmem:[%s5155_s1 + $0x178] sm:$0xff]  ;;  %v87_v4 = vld [vmem:[%s5155_s1 + $0x160] sm:$0xff]  ;;  %v89_v7 = vld [vmem:[%s5155_s1 + $0x170] sm:$0xff] }
  0x11   :  { %v2927_v6 = vpack.c.bf16 %v90_v62, %v86_v61  ;;  %v92_v8 = vld [vmem:[%s5155_s1 + $0x188] sm:$0xff]  ;;  %v94_v10 = vld [vmem:[%s5155_s1 + $0x198] sm:$0xff]  ;;  %v2897_v12 = vpack.c.bf16 %v87_v4, %v83_v2  ;;  %v2929_v13 = vpack.c.bf16 %v89_v7, %v85_v5  ;;  %v91_v15 = vld [vmem:[%s5155_s1 + $0x180] sm:$0xff] }
  0x12   :  { %2890 = vmatpush1.bf16.msra.mxu0 %v2889_v51  ;;  %v96_v9 = vld [vmem:[%s5155_s1 + $0x1a8] sm:$0xff]  ;;  %v98_v11 = vld [vmem:[%s5155_s1 + $0x1b8] sm:$0xff]  ;;  %v95_v16 = vld [vmem:[%s5155_s1 + $0x1a0] sm:$0xff] }
  0x13   :  { %2922 = vmatpush1.bf16.msra.mxu1 %v2921_v52  ;;  %2892 = vmatprep.subr.bf16.mxu0 %v2891_v53  ;;  %v2899_v14 = vpack.c.bf16 %v96_v9, %v92_v8  ;;  %v93_v17 = vld [vmem:[%s5155_s1 + $0x190] sm:$0xff]  ;;  %v2931_v18 = vpack.c.bf16 %v98_v11, %v94_v10  ;;  %v100_v20 = vld [vmem:[%s5155_s1 + $0x1c8] sm:$0xff]  ;;  %v102_v22 = vld [vmem:[%s5155_s1 + $0x1d8] sm:$0xff]  ;;  %v2901_v24 = vpack.c.bf16 %v95_v16, %v91_v15 }
  0x14   :  { %2924 = vmatprep.subr.bf16.mxu1 %v2923_v57  ;;  %v97_v19 = vld [vmem:[%s5155_s1 + $0x1b0] sm:$0xff]  ;;  %v104_v21 = vld [vmem:[%s5155_s1 + $0x1e8] sm:$0xff]  ;;  %v106_v23 = vld [vmem:[%s5155_s1 + $0x1f8] sm:$0xff] }
  0x15   :  { %v2933_v25 = vpack.c.bf16 %v97_v19, %v93_v17  ;;  %v2903_v26 = vpack.c.bf16 %v104_v21, %v100_v20  ;;  %v99_v27 = vld [vmem:[%s5155_s1 + $0x1c0] sm:$0xff]  ;;  %v101_v29 = vld [vmem:[%s5155_s1 + $0x1d0] sm:$0xff]  ;;  %v2935_v30 = vpack.c.bf16 %v106_v23, %v102_v22  ;;  %v397_v32 = vld [vmem:[%s5156_s2 + $0x8] sm:$0xff] }
  0x16   :  { %2894 = vmatpush1.bf16.msra.mxu0 %v2893_v63  ;;  %v103_v28 = vld [vmem:[%s5155_s1 + $0x1e0] sm:$0xff]  ;;  %v105_v31 = vld [vmem:[%s5155_s1 + $0x1f0] sm:$0xff]  ;;  %v401_v33 = vld [vmem:[%s5156_s2 + $0x28] sm:$0xff] }
  0x17   :  { %2926 = vmatpush1.bf16.msra.mxu1 %v2925_v0  ;;  %2896 = vmatprep.subr.bf16.mxu0 %v2895_v1  ;;  %v399_v34 = vld [vmem:[%s5156_s2 + $0x18] sm:$0xff]  ;;  %v2905_v36 = vpack.c.bf16 %v103_v28, %v99_v27  ;;  %v2937_v37 = vpack.c.bf16 %v105_v31, %v101_v29  ;;  %v4008_v38 = vpack.c.bf16 %v401_v33, %v397_v32  ;;  %v396_v39 = vld [vmem:[%s5156_s2] sm:$0xff]  ;;  %v398_v42 = vld [vmem:[%s5156_s2 + $0x10] sm:$0xff] }
  0x18   :  { %2928 = vmatprep.subr.bf16.mxu1 %v2927_v6  ;;  %v403_v35 = vld [vmem:[%s5156_s2 + $0x38] sm:$0xff]  ;;  %v400_v40 = vld [vmem:[%s5156_s2 + $0x20] sm:$0xff]  ;;  %v402_v43 = vld [vmem:[%s5156_s2 + $0x30] sm:$0xff] }
  0x19   :  { %v4016_v41 = vpack.c.bf16 %v403_v35, %v399_v34  ;;  %v405_v44 = vld [vmem:[%s5156_s2 + $0x48] sm:$0xff]  ;;  %v35_v46 = vld [vmem:[%s5157_s0] sm:$0xff]  ;;  %v4033_v47 = vpack.c.bf16 %v400_v40, %v396_v39  ;;  %v407_v48 = vld [vmem:[%s5156_s2 + $0x58] sm:$0xff]  ;;  %v4042_v50 = vpack.c.bf16 %v402_v43, %v398_v42 }
  0x1a   :  { %2898 = vmatpush1.bf16.msra.mxu0 %v2897_v12  ;;  %v409_v45 = vld [vmem:[%s5156_s2 + $0x68] sm:$0xff]  ;;  %v411_v49 = vld [vmem:[%s5156_s2 + $0x78] sm:$0xff]  ;;  %v404_v51 = vld [vmem:[%s5156_s2 + $0x40] sm:$0xff] }
  0x1b   :  { %2930 = vmatpush1.bf16.msra.mxu1 %v2929_v13  ;;  %2900 = vmatprep.subr.bf16.mxu0 %v2899_v14  ;;  %v408_v52 = vld [vmem:[%s5156_s2 + $0x60] sm:$0xff]  ;;  %v4051_v53 = vpack.c.bf16 %v409_v45, %v405_v44  ;;  %v406_v54 = vld [vmem:[%s5156_s2 + $0x50] sm:$0xff]  ;;  %v4059_v56 = vpack.c.bf16 %v411_v49, %v407_v48  ;;  %v413_v57 = vld [vmem:[%s5156_s2 + $0x88] sm:$0xff] }
  0x1c   :  { %2932 = vmatprep.subr.bf16.mxu1 %v2931_v18  ;;  %v410_v55 = vld [vmem:[%s5156_s2 + $0x70] sm:$0xff]  ;;  %v417_v58 = vld [vmem:[%s5156_s2 + $0xa8] sm:$0xff]  ;;  %v4071_v60 = vpack.c.bf16 %v408_v52, %v404_v51  ;;  %v415_v61 = vld [vmem:[%s5156_s2 + $0x98] sm:$0xff] }
  0x1d   :  { %v36_v59 = vld [vmem:[%s5157_s0 + $0x8] sm:$0xff]  ;;  %v419_v62 = vld [vmem:[%s5156_s2 + $0xb8] sm:$0xff]  ;;  %v4081_v63 = vpack.c.bf16 %v410_v55, %v406_v54  ;;  %v412_v0 = vld [vmem:[%s5156_s2 + $0x80] sm:$0xff]  ;;  %v4091_v2 = vpack.c.bf16 %v417_v58, %v413_v57 }
  0x1e   :  { %2902 = vmatpush1.bf16.msra.mxu0 %v2901_v24  ;;  %v416_v1 = vld [vmem:[%s5156_s2 + $0xa0] sm:$0xff]  ;;  %v414_v4 = vld [vmem:[%s5156_s2 + $0x90] sm:$0xff]  ;;  %v4100_v6 = vpack.c.bf16 %v419_v62, %v415_v61  ;;  %v421_v7 = vld [vmem:[%s5156_s2 + $0xc8] sm:$0xff] }
  0x1f   :  { %2934 = vmatpush1.bf16.msra.mxu1 %v2933_v25  ;;  %2904 = vmatprep.subr.bf16.mxu0 %v2903_v26  ;;  %v418_v5 = vld [vmem:[%s5156_s2 + $0xb0] sm:$0xff]  ;;  %v425_v8 = vld [vmem:[%s5156_s2 + $0xe8] sm:$0xff]  ;;  %v4112_v10 = vpack.c.bf16 %v416_v1, %v412_v0  ;;  %v423_v11 = vld [vmem:[%s5156_s2 + $0xd8] sm:$0xff] }
  0x20   :  { %2936 = vmatprep.subr.bf16.mxu1 %v2935_v30  ;;  %v37_v9 = vld [vmem:[%s5157_s0 + $0x10] sm:$0xff]  ;;  %v427_v12 = vld [vmem:[%s5156_s2 + $0xf8] sm:$0xff]  ;;  %v4122_v13 = vpack.c.bf16 %v418_v5, %v414_v4  ;;  %v420_v14 = vld [vmem:[%s5156_s2 + $0xc0] sm:$0xff]  ;;  %v4132_v16 = vpack.c.bf16 %v425_v8, %v421_v7 }
  0x21   :  { %v424_v15 = vld [vmem:[%s5156_s2 + $0xe0] sm:$0xff]  ;;  %v422_v17 = vld [vmem:[%s5156_s2 + $0xd0] sm:$0xff]  ;;  %v4141_v19 = vpack.c.bf16 %v427_v12, %v423_v11  ;;  %v429_v20 = vld [vmem:[%s5156_s2 + $0x108] sm:$0xff] }
  0x22   :  { %2906 = vmatpush1.bf16.msra.mxu0 %v2905_v36  ;;  %v426_v18 = vld [vmem:[%s5156_s2 + $0xf0] sm:$0xff]  ;;  %v433_v21 = vld [vmem:[%s5156_s2 + $0x128] sm:$0xff]  ;;  %v38_v22 = vld [vmem:[%s5157_s0 + $0x18] sm:$0xff]  ;;  %v4153_v23 = vpack.c.bf16 %v424_v15, %v420_v14 }
  0x23   :  { %2938 = vmatpush1.bf16.msra.mxu1 %v2937_v37  ;;  %2940 = vmatprep.subr.bf16.mxu0 %v4008_v38  ;;  %v431_v24 = vld [vmem:[%s5156_s2 + $0x118] sm:$0xff]  ;;  %v4163_v26 = vpack.c.bf16 %v426_v18, %v422_v17  ;;  %v428_v27 = vld [vmem:[%s5156_s2 + $0x100] sm:$0xff]  ;;  %v4173_v29 = vpack.c.bf16 %v433_v21, %v429_v20  ;;  %v430_v30 = vld [vmem:[%s5156_s2 + $0x110] sm:$0xff] }
  0x24   :  { %2972 = vmatprep.subr.bf16.mxu1 %v4016_v41  ;;  %v435_v25 = vld [vmem:[%s5156_s2 + $0x138] sm:$0xff]  ;;  %v432_v28 = vld [vmem:[%s5156_s2 + $0x120] sm:$0xff]  ;;  %v434_v31 = vld [vmem:[%s5156_s2 + $0x130] sm:$0xff] }
  0x25   :  { %194 = vmatmul.mubr.f32.vlgmr.msra.gmra.mrb[0].mxu0 %v35_v46  ;;  %v4182_v32 = vpack.c.bf16 %v435_v25, %v431_v24  ;;  %v437_v33 = vld [vmem:[%s5156_s2 + $0x148] sm:$0xff]  ;;  %v39_v35 = vld [vmem:[%s5157_s0 + $0x20] sm:$0xff]  ;;  %v4194_v36 = vpack.c.bf16 %v432_v28, %v428_v27  ;;  %v439_v37 = vld [vmem:[%s5156_s2 + $0x158] sm:$0xff]  ;;  %v4204_v40 = vpack.c.bf16 %v434_v31, %v430_v30  ;;  %v109_v28 = vlaneseq }
  0x26   :  { %307 = vmatmul.mubr.f32.vlgmr.msra.gmra.mrb[0].mxu1 %v35_v46  ;;  %2942 = vmatpush1.bf16.msra.mxu0 %v4033_v47  ;;  %v441_v34 = vld [vmem:[%s5156_s2 + $0x168] sm:$0xff]  ;;  %v443_v39 = vld [vmem:[%s5156_s2 + $0x178] sm:$0xff]  ;;  %v436_v42 = vld [vmem:[%s5156_s2 + $0x140] sm:$0xff] }
  0x27   :  { %2974 = vmatpush1.bf16.msra.mxu1 %v4042_v50  ;;  %199 = vmatprep.mubr.f32.mxu0 %v3756_v3  ;;  %v440_v43 = vld [vmem:[%s5156_s2 + $0x160] sm:$0xff]  ;;  %v4214_v44 = vpack.c.bf16 %v441_v34, %v437_v33  ;;  %v438_v45 = vld [vmem:[%s5156_s2 + $0x150] sm:$0xff]  ;;  %v4223_v48 = vpack.c.bf16 %v443_v39, %v439_v37  ;;  %v445_v49 = vld [vmem:[%s5156_s2 + $0x188] sm:$0xff]  ;;  %v110_v30 = vshrl.u32 %v109_v28, 7 }
  0x28   :  { %312 = vmatprep.mubr.f32.mxu1 %v3756_v3  ;;  %2944 = vmatprep.subr.bf16.mxu0 %v4051_v53  ;;  %v442_v46 = vld [vmem:[%s5156_s2 + $0x170] sm:$0xff]  ;;  %v449_v51 = vld [vmem:[%s5156_s2 + $0x1a8] sm:$0xff]  ;;  %v4235_v54 = vpack.c.bf16 %v440_v43, %v436_v42  ;;  %v447_v55 = vld [vmem:[%s5156_s2 + $0x198] sm:$0xff] }
  0x29   :  { %200 = vmatmul.mubr.f32.gmra.mrb[2].mxu0 %v36_v59  ;;  %2976 = vmatprep.subr.bf16.mxu1 %v4059_v56  ;;  %v40_v52 = vld [vmem:[%s5157_s0 + $0x28] sm:$0xff]  ;;  %v451_v57 = vld [vmem:[%s5156_s2 + $0x1b8] sm:$0xff]  ;;  %v4245_v58 = vpack.c.bf16 %v442_v46, %v438_v45  ;;  %v448_v61 = vld [vmem:[%s5156_s2 + $0x1a0] sm:$0xff]  ;;  %v4255_v62 = vpack.c.bf16 %v449_v51, %v445_v49  ;;  %v111_v31 = vsub.s32 0, %v110_v30  ;;  %v115_v34 = vsub.s32 1, %v110_v30 }
  0x2a   :  { %313 = vmatmul.mubr.f32.gmra.mrb[2].mxu1 %v36_v59  ;;  %2946 = vmatpush1.bf16.msra.mxu0 %v4071_v60  ;;  %v444_v59 = vld [vmem:[%s5156_s2 + $0x180] sm:$0xff]  ;;  %v446_v0 = vld [vmem:[%s5156_s2 + $0x190] sm:$0xff]  ;;  %v4264_v4 = vpack.c.bf16 %v451_v57, %v447_v55  ;;  %v453_v5 = vld [vmem:[%s5156_s2 + $0x1c8] sm:$0xff]  ;;  %v123_v42 = vsub.s32 3, %v110_v30  ;;  %v119_v55 = vsub.s32 2, %v110_v30 }
  0x2b   :  { %2978 = vmatpush1.bf16.msra.mxu1 %v4081_v63  ;;  %205 = vmatprep.mubr.f32.mxu0 %v3756_v3  ;;  %v450_v1 = vld [vmem:[%s5156_s2 + $0x1b0] sm:$0xff]  ;;  %v457_v7 = vld [vmem:[%s5156_s2 + $0x1e8] sm:$0xff]  ;;  %v455_v11 = vld [vmem:[%s5156_s2 + $0x1d8] sm:$0xff] }
  0x2c   :  { %318 = vmatprep.mubr.f32.mxu1 %v3756_v3  ;;  %2948 = vmatprep.subr.bf16.mxu0 %v4091_v2  ;;  %v41_v8 = vld [vmem:[%s5157_s0 + $0x30] sm:$0xff]  ;;  %v459_v12 = vld [vmem:[%s5156_s2 + $0x1f8] sm:$0xff]  ;;  %v4286_v14 = vpack.c.bf16 %v450_v1, %v446_v0  ;;  %v452_v15 = vld [vmem:[%s5156_s2 + $0x1c0] sm:$0xff]  ;;  %v4296_v18 = vpack.c.bf16 %v457_v7, %v453_v5 }
  0x2d   :  { %206 = vmatmul.mubr.f32.gmra.mrb[4].mxu0 %v37_v9  ;;  %2980 = vmatprep.subr.bf16.mxu1 %v4100_v6  ;;  %v456_v17 = vld [vmem:[%s5156_s2 + $0x1e0] sm:$0xff]  ;;  %v454_v20 = vld [vmem:[%s5156_s2 + $0x1d0] sm:$0xff]  ;;  %v42_v24 = vld [vmem:[%s5157_s0 + $0x38] sm:$0xff] }
  0x2e   :  { %319 = vmatmul.mubr.f32.gmra.mrb[4].mxu1 %v37_v9  ;;  %2950 = vmatpush1.bf16.msra.mxu0 %v4112_v10  ;;  %v4276_v9 = vpack.c.bf16 %v448_v61, %v444_v59  ;;  %v458_v21 = vld [vmem:[%s5156_s2 + $0x1f0] sm:$0xff]  ;;  %v4311_v25 = vpack.c.bf16 %v456_v17, %v452_v15  ;;  %v107_v33 = vld [vmem:[%s5158_s3] sm:$0xf] }
  0x2f   :  { %2982 = vmatpush1.bf16.msra.mxu1 %v4122_v13  ;;  %211 = vmatprep.mubr.f32.mxu0 %v3756_v3  ;;  %v4315_v27 = vpack.c.bf16 %v458_v21, %v454_v20  ;;  %v4367_v37 = vrot.slane %v107_v33, %v115_v34  ;;  %v4374_v59 = vrot.slane %v107_v33, %v119_v55 }
  0x30   :  { %324 = vmatprep.mubr.f32.mxu1 %v3756_v3  ;;  %2952 = vmatprep.subr.bf16.mxu0 %v4132_v16 }
  0x31   :  { %212 = vmatmul.mubr.f32.gmra.mrb[6].mxu0 %v38_v22  ;;  %2984 = vmatprep.subr.bf16.mxu1 %v4141_v19 }
  0x32   :  { %325 = vmatmul.mubr.f32.gmra.mrb[6].mxu1 %v38_v22  ;;  %2954 = vmatpush1.bf16.msra.mxu0 %v4153_v23  ;;  %v4305_v22 = vpack.c.bf16 %v459_v12, %v455_v11 }
  0x33   :  { %2986 = vmatpush1.bf16.msra.mxu1 %v4163_v26  ;;  %217 = vmatprep.mubr.f32.mxu0 %v3756_v3 }
  0x34   :  { %330 = vmatprep.mubr.f32.mxu1 %v3756_v3  ;;  %2956 = vmatprep.subr.bf16.mxu0 %v4173_v29 }
  0x35   :  { %218 = vmatmul.mubr.f32.gmra.mrb[8].mxu0 %v39_v35  ;;  %2988 = vmatprep.subr.bf16.mxu1 %v4182_v32 }
  0x36   :  { %331 = vmatmul.mubr.f32.gmra.mrb[8].mxu1 %v39_v35  ;;  %2958 = vmatpush1.bf16.msra.mxu0 %v4194_v36  ;;  %v4365_v35 = vrot.slane %v107_v33, %v111_v31 }
  0x37   :  { %2990 = vmatpush1.bf16.msra.mxu1 %v4204_v40  ;;  %223 = vmatprep.mubr.f32.mxu0 %v3756_v3 }
  0x38   :  { %336 = vmatprep.mubr.f32.mxu1 %v3756_v3  ;;  %2960 = vmatprep.subr.bf16.mxu0 %v4214_v44 }
  0x39   :  { %224 = vmatmul.mubr.f32.gmra.mrb[10].mxu0 %v40_v52  ;;  %2992 = vmatprep.subr.bf16.mxu1 %v4223_v48 }
  0x3a   :  { %337 = vmatmul.mubr.f32.gmra.mrb[10].mxu1 %v40_v52  ;;  %2962 = vmatpush1.bf16.msra.mxu0 %v4235_v54  ;;  %v4371_v52 = vrot.slane %v107_v33, %v123_v42 }
  0x3b   :  { %2994 = vmatpush1.bf16.msra.mxu1 %v4245_v58  ;;  %229 = vmatprep.mubr.f32.mxu0 %v3756_v3 }
  0x3c   :  { %342 = vmatprep.mubr.f32.mxu1 %v3756_v3  ;;  %2964 = vmatprep.subr.bf16.mxu0 %v4255_v62 }
  0x3d   :  { %230 = vmatmul.mubr.f32.gmra.mrb[12].mxu0 %v41_v8  ;;  %2996 = vmatprep.subr.bf16.mxu1 %v4264_v4 }
  0x3e   :  { %343 = vmatmul.mubr.f32.gmra.mrb[12].mxu1 %v41_v8  ;;  %2966 = vmatpush1.bf16.msra.mxu0 %v4276_v9 }
  0x3f   :  { %2998 = vmatpush1.bf16.msra.mxu1 %v4286_v14  ;;  %235 = vmatprep.mubr.f32.mxu0 %v3756_v3 }
  0x40   :  { %348 = vmatprep.mubr.f32.mxu1 %v3756_v3  ;;  %2968 = vmatprep.subr.bf16.mxu0 %v4296_v18 }
  0x41   :  { %236 = vmatmul.mubr.f32.gmra.mrb[14].mxu0 %v42_v24  ;;  %3000 = vmatprep.subr.bf16.mxu1 %v4305_v22 }
  0x42   :  { %349 = vmatmul.mubr.f32.gmra.mrb[14].mxu1 %v42_v24  ;;  %2970 = vmatpush1.bf16.msra.mxu0 %v4311_v25 }
  0x43   :  { %3002 = vmatpush1.bf16.msra.mxu1 %v4315_v27  ;;  %524 = vmatprep.mubr.f32.mxu0 %v3756_v3 }
  0x44   :  { %595 = vmatprep.mubr.f32.mxu1 %v3756_v3  ;;  %3004 = vmatprep.subr.bf16.mxu0 %v4008_v38 }
  0x45   :  { %525 = vmatmul.mubr.f32.vlgmr.msra.gmra.mrb[0].mxu0 %v3756_v3  ;;  %3036 = vmatprep.subr.bf16.mxu1 %v4016_v41 }
  0x46   :  { %596 = vmatmul.mubr.f32.vlgmr.msra.gmra.mrb[0].mxu1 %v3756_v3  ;;  %3006 = vmatpush1.bf16.msra.mxu0 %v4033_v47 }
  0x47   :  { %3038 = vmatpush1.bf16.msra.mxu1 %v4042_v50  ;;  %3008 = vmatprep.subr.bf16.mxu0 %v4051_v53 }
  0x48   :  { %3040 = vmatprep.subr.bf16.mxu1 %v4059_v56  ;;  %766 = vmatprep.mubr.f32.mxu0 %v3756_v3 }
  0x49   :  { %837 = vmatprep.mubr.f32.mxu1 %v3756_v3 }
  0x4a   :  { %3010 = vmatpush1.bf16.msra.mxu0 %v4071_v60 }
  0x4b   :  { %3042 = vmatpush1.bf16.msra.mxu1 %v4081_v63  ;;  %3012 = vmatprep.subr.bf16.mxu0 %v4091_v2 }
  0x4c   :  { %3044 = vmatprep.subr.bf16.mxu1 %v4100_v6 }
  0x4e   :  { %3014 = vmatpush1.bf16.msra.mxu0 %v4112_v10 }
  0x4f   :  { %3046 = vmatpush1.bf16.msra.mxu1 %v4122_v13  ;;  %3016 = vmatprep.subr.bf16.mxu0 %v4132_v16 }
  0x50   :  { %3048 = vmatprep.subr.bf16.mxu1 %v4141_v19 }
  0x52   :  { %3018 = vmatpush1.bf16.msra.mxu0 %v4153_v23 }
  0x53   :  { %3050 = vmatpush1.bf16.msra.mxu1 %v4163_v26  ;;  %3020 = vmatprep.subr.bf16.mxu0 %v4173_v29 }
  0x54   :  { %3052 = vmatprep.subr.bf16.mxu1 %v4182_v32 }
  0x56   :  { %3022 = vmatpush1.bf16.msra.mxu0 %v4194_v36 }
  0x57   :  { %3054 = vmatpush1.bf16.msra.mxu1 %v4204_v40  ;;  %3024 = vmatprep.subr.bf16.mxu0 %v4214_v44 }
  0x58   :  { %3056 = vmatprep.subr.bf16.mxu1 %v4223_v48 }
  0x5a   :  { %3026 = vmatpush1.bf16.msra.mxu0 %v4235_v54 }
  0x5b   :  { %3058 = vmatpush1.bf16.msra.mxu1 %v4245_v58  ;;  %3028 = vmatprep.subr.bf16.mxu0 %v4255_v62 }
  0x5c   :  { %3060 = vmatprep.subr.bf16.mxu1 %v4264_v4 }
  0x5e   :  { %3030 = vmatpush1.bf16.msra.mxu0 %v4276_v9 }
  0x5f   :  { %3062 = vmatpush1.bf16.msra.mxu1 %v4286_v14  ;;  %3032 = vmatprep.subr.bf16.mxu0 %v4296_v18 }
  0x60   :  { %3064 = vmatprep.subr.bf16.mxu1 %v4305_v22 }
  0x62   :  { %3034 = vmatpush1.bf16.msra.mxu0 %v4311_v25 }
  0x63   :  { %3066 = vmatpush1.bf16.msra.mxu1 %v4315_v27  ;;  %3068 = vmatprep.subr.bf16.mxu0 %v4008_v38 }
  0x64   :  { %3100 = vmatprep.subr.bf16.mxu1 %v4016_v41 }
 0x118   :  { %v526_v39 = vpop.f32.mrb[0].mxu0 }
 0x119   :  { %v3515_v43 = vadd.f32 %v526_v39, %v4365_v35  ;;  %v597_v45 = vpop.f32.mrb[0].mxu1  ;;  %v528_v38 = vpop.f32.mrb[1].mxu0 }
 0x11a   :  { %v3516_v41 = vadd.f32 %v528_v38, %v4367_v37  ;;  %v599_v46 = vpop.f32.mrb[1].mxu1  ;;  %v3531_v0 = vadd.f32 %v597_v45, %v4374_v59 }
 0x11b   :  { %v2713_v49 = vmul.f32 -1.442695, %v3515_v43  ;;  %v3532_v57 = vadd.f32 %v599_v46, %v4371_v52 }
 0x11c   :  { %v2714_v51 = vmul.f32 -1.442695, %v3516_v41 }
 0x11d   :  { %3580 = vpow2.f32 %v2713_v49  ;;  %v2715_v61 = vmul.f32 -1.442695, %v3532_v57 }
 0x11e   :  { %3582 = vpow2.f32 %v2714_v51 }
 0x11f   :  { %3584 = vpow2.f32 %v2715_v61 }
 0x120   :  { %3586 = vtanh.f32 %v3531_v0 }
 0x127   :  { %v3581_v1 = vpop.eup %3580 }
 0x128   :  { %v3583_v5 = vpop.eup %3582  ;;  %v609_v7 = vadd.f32 1.0, %v3581_v1 }
 0x129   :  { %v615_v8 = vadd.f32 1.0, %v3583_v5  ;;  %v3585_v11 = vpop.eup %3584 }
 0x12a   :  { %3588 = vrcp.f32 %v609_v7  ;;  %v3587_v12 = vpop.eup %3586  ;;  %v622_v21 = vadd.f32 1.0, %v3585_v11 }
 0x12b   :  { %3590 = vrcp.f32 %v615_v8 }
 0x12c   :  { %3592 = vrcp.f32 %v622_v21 }
 0x134   :  { %v3589_v15 = vpop.eup %3588 }
 0x135   :  { %v3591_v17 = vpop.eup %3590  ;;  %v626_v20 = vmul.f32 %v3589_v15, %v3587_v12  ;;  %v1125_v15 = vld [vmem:[%s5156_s2 + $0x8] sm:$0xff] }
 0x136   :  { %v625_v24 = vmul.f32 0.0, %v3591_v17  ;;  %v3593_v30 = vpop.eup %3592  ;;  %v1129_v17 = vld [vmem:[%s5156_s2 + $0x28] sm:$0xff] }
 0x137   :  { %v4439_v21 = vpack.c.bf16 %v1129_v17, %v1125_v15 }
 0x138   :  { %v4377_v28 = vadd.f32 %v626_v20, %v625_v24  ;;  %v1127_v20 = vld [vmem:[%s5156_s2 + $0x18] sm:$0xff] }
 0x139   :  { %v1131_v24 = vld [vmem:[%s5156_s2 + $0x38] sm:$0xff] }
 0x13a   :  { %3594 = vtanh.f32 %v4377_v28 }
 0x144   :  { %v3595_v31 = vpop.eup %3594 }
 0x145   :  { %v4380_v33 = vmul.f32 %v3595_v31, %v3593_v30  ;;  %v1128_v30 = vld [vmem:[%s5156_s2 + $0x20] sm:$0xff]  ;;  %v4450_v31 = vpack.c.bf16 %v1131_v24, %v1127_v20  ;;  %v1385_v20 = vld [vmem:[%s5156_s2 + $0x90] sm:$0xff] }
 0x146   :  { %v1389_v24 = vld [vmem:[%s5156_s2 + $0xb0] sm:$0xff] }
 0x147   :  { %767 = vmatmul.mubr.f32.vlgmr.msra.gmra.mrb[2].mxu0 %v4380_v33  ;;  %838 = vmatmul.mubr.f32.vlgmr.msra.gmra.mrb[2].mxu1 %v4380_v33 }
 0x148   :  { %3070 = vmatpush1.bf16.msra.mxu0 %v4033_v47  ;;  %3102 = vmatpush1.bf16.msra.mxu1 %v4042_v50 }
 0x149   :  { %3072 = vmatprep.subr.bf16.mxu0 %v4051_v53  ;;  %3104 = vmatprep.subr.bf16.mxu1 %v4059_v56 }
 0x14a   :  { %1009 = vmatprep.mubr.f32.mxu0 %v3756_v3  ;;  %1080 = vmatprep.mubr.f32.mxu1 %v3756_v3 }
 0x14c   :  { %3074 = vmatpush1.bf16.msra.mxu0 %v4071_v60  ;;  %3106 = vmatpush1.bf16.msra.mxu1 %v4081_v63 }
 0x14d   :  { %3076 = vmatprep.subr.bf16.mxu0 %v4091_v2  ;;  %3108 = vmatprep.subr.bf16.mxu1 %v4100_v6 }
 0x150   :  { %3078 = vmatpush1.bf16.msra.mxu0 %v4112_v10  ;;  %3110 = vmatpush1.bf16.msra.mxu1 %v4122_v13 }
 0x151   :  { %3080 = vmatprep.subr.bf16.mxu0 %v4132_v16  ;;  %3112 = vmatprep.subr.bf16.mxu1 %v4141_v19 }
 0x154   :  { %3082 = vmatpush1.bf16.msra.mxu0 %v4153_v23  ;;  %3114 = vmatpush1.bf16.msra.mxu1 %v4163_v26 }
 0x155   :  { %3084 = vmatprep.subr.bf16.mxu0 %v4173_v29  ;;  %3116 = vmatprep.subr.bf16.mxu1 %v4182_v32 }
 0x158   :  { %3086 = vmatpush1.bf16.msra.mxu0 %v4194_v36  ;;  %3118 = vmatpush1.bf16.msra.mxu1 %v4204_v40 }
 0x159   :  { %3088 = vmatprep.subr.bf16.mxu0 %v4214_v44  ;;  %3120 = vmatprep.subr.bf16.mxu1 %v4223_v48 }
 0x15c   :  { %3090 = vmatpush1.bf16.msra.mxu0 %v4235_v54  ;;  %3122 = vmatpush1.bf16.msra.mxu1 %v4245_v58 }
 0x15d   :  { %3092 = vmatprep.subr.bf16.mxu0 %v4255_v62  ;;  %3124 = vmatprep.subr.bf16.mxu1 %v4264_v4 }
 0x160   :  { %3094 = vmatpush1.bf16.msra.mxu0 %v4276_v9  ;;  %3126 = vmatpush1.bf16.msra.mxu1 %v4286_v14 }
 0x161   :  { %3096 = vmatprep.subr.bf16.mxu0 %v4296_v18  ;;  %3128 = vmatprep.subr.bf16.mxu1 %v4305_v22 }
 0x164   :  { %3098 = vmatpush1.bf16.msra.mxu0 %v4311_v25  ;;  %3130 = vmatpush1.bf16.msra.mxu1 %v4315_v27 }
 0x165   :  { %3132 = vmatprep.subr.bf16.mxu0 %v4439_v21  ;;  %3164 = vmatprep.subr.bf16.mxu1 %v4450_v31 }
 0x21a   :  { %v768_v47 = vpop.f32.mrb[2].mxu0  ;;  %v839_v50 = vpop.f32.mrb[2].mxu1 }
 0x21b   :  { %v3517_v53 = vadd.f32 %v768_v47, %v4365_v35  ;;  %v770_v56 = vpop.f32.mrb[3].mxu0  ;;  %v841_v60 = vpop.f32.mrb[3].mxu1  ;;  %v3533_v45 = vadd.f32 %v839_v50, %v4374_v59  ;;  %v1126_v50 = vld [vmem:[%s5156_s2 + $0x10] sm:$0xff] }
 0x21c   :  { %v3518_v63 = vadd.f32 %v770_v56, %v4367_v37  ;;  %v3534_v42 = vadd.f32 %v841_v60, %v4371_v52  ;;  %v1133_v60 = vld [vmem:[%s5156_s2 + $0x48] sm:$0xff] }
 0x21d   :  { %v2716_v34 = vmul.f32 -1.442695, %v3517_v53  ;;  %v1130_v53 = vld [vmem:[%s5156_s2 + $0x30] sm:$0xff] }
 0x21e   :  { %v2717_v39 = vmul.f32 -1.442695, %v3518_v63  ;;  %v2718_v43 = vmul.f32 -1.442695, %v3534_v42  ;;  %v4461_v56 = vpack.c.bf16 %v1130_v53, %v1126_v50  ;;  %v1137_v63 = vld [vmem:[%s5156_s2 + $0x68] sm:$0xff]  ;;  %v1139_v42 = vld [vmem:[%s5156_s2 + $0x78] sm:$0xff] }
 0x21f   :  { %3596 = vpow2.f32 %v2716_v34  ;;  %v1135_v34 = vld [vmem:[%s5156_s2 + $0x58] sm:$0xff]  ;;  %v1396_v50 = vld [vmem:[%s5156_s2 + $0xe8] sm:$0xff] }
 0x220   :  { %3598 = vpow2.f32 %v2717_v39  ;;  %v4475_v39 = vpack.c.bf16 %v1137_v63, %v1133_v60  ;;  %v1394_v53 = vld [vmem:[%s5156_s2 + $0xd8] sm:$0xff] }
 0x221   :  { %3600 = vpow2.f32 %v2718_v43  ;;  %v1132_v43 = vld [vmem:[%s5156_s2 + $0x40] sm:$0xff]  ;;  %v1398_v63 = vld [vmem:[%s5156_s2 + $0xf8] sm:$0xff] }
 0x222   :  { %3602 = vtanh.f32 %v3533_v45  ;;  %v1136_v45 = vld [vmem:[%s5156_s2 + $0x60] sm:$0xff] }
 0x229   :  { %v3597_v38 = vpop.eup %3596 }
 0x22a   :  { %v3599_v41 = vpop.eup %3598  ;;  %v851_v46 = vadd.f32 1.0, %v3597_v38  ;;  %v4486_v38 = vpack.c.bf16 %v1139_v42, %v1135_v34  ;;  %v1391_v34 = vld [vmem:[%s5156_s2 + $0xc0] sm:$0xff] }
 0x22b   :  { %v857_v49 = vadd.f32 1.0, %v3599_v41  ;;  %v3601_v51 = vpop.eup %3600  ;;  %v4488_v41 = vpack.c.bf16 %v1136_v45, %v1132_v43  ;;  %v1395_v42 = vld [vmem:[%s5156_s2 + $0xe0] sm:$0xff]  ;;  %v4604_v43 = vpack.c.bf16 %v1398_v63, %v1394_v53  ;;  %v1421_v63 = vld [vmem:[%s5156_s2 + $0x1b0] sm:$0xff] }
 0x22c   :  { %3604 = vrcp.f32 %v851_v46  ;;  %v3603_v55 = vpop.eup %3602  ;;  %v864_v1 = vadd.f32 1.0, %v3601_v51  ;;  %v1134_v46 = vld [vmem:[%s5156_s2 + $0x50] sm:$0xff]  ;;  %v4606_v45 = vpack.c.bf16 %v1395_v42, %v1391_v34  ;;  %v1424_v34 = vld [vmem:[%s5156_s2 + $0x1c8] sm:$0xff] }
 0x22d   :  { %3606 = vrcp.f32 %v857_v49  ;;  %v1138_v49 = vld [vmem:[%s5156_s2 + $0x70] sm:$0xff]  ;;  %v1428_v42 = vld [vmem:[%s5156_s2 + $0x1e8] sm:$0xff] }
 0x22e   :  { %3608 = vrcp.f32 %v864_v1  ;;  %v4497_v51 = vpack.c.bf16 %v1138_v49, %v1134_v46  ;;  %v1386_v1 = vld [vmem:[%s5156_s2 + $0x98] sm:$0xff]  ;;  %v1393_v46 = vld [vmem:[%s5156_s2 + $0xd0] sm:$0xff] }
 0x22f   :  { %v1397_v49 = vld [vmem:[%s5156_s2 + $0xf0] sm:$0xff] }
 0x236   :  { %v3605_v57 = vpop.eup %3604 }
 0x237   :  { %v3607_v61 = vpop.eup %3606  ;;  %v868_v0 = vmul.f32 %v3605_v57, %v3603_v55 }
 0x238   :  { %v867_v5 = vmul.f32 %v3607_v61, %v4377_v28  ;;  %v3609_v8 = vpop.eup %3608  ;;  %v1124_v28 = vld [vmem:[%s5156_s2] sm:$0xff]  ;;  %v1384_v61 = vld [vmem:[%s5156_s2 + $0x88] sm:$0xff] }
 0x239   :  { %v4452_v47 = vpack.c.bf16 %v1128_v30, %v1124_v28  ;;  %v4579_v28 = vpack.c.bf16 %v1389_v24, %v1385_v20  ;;  %v1392_v30 = vld [vmem:[%s5156_s2 + $0xc8] sm:$0xff]  ;;  %v1415_v24 = vld [vmem:[%s5156_s2 + $0x180] sm:$0xff] }
 0x23a   :  { %v4421_v7 = vadd.f32 %v868_v0, %v867_v5  ;;  %v1388_v0 = vld [vmem:[%s5156_s2 + $0xa8] sm:$0xff]  ;;  %v4593_v60 = vpack.c.bf16 %v1396_v50, %v1392_v30  ;;  %v1419_v30 = vld [vmem:[%s5156_s2 + $0x1a0] sm:$0xff]  ;;  %v1417_v50 = vld [vmem:[%s5156_s2 + $0x190] sm:$0xff] }
 0x23b   :  { %v4557_v5 = vpack.c.bf16 %v1388_v0, %v1384_v61  ;;  %v1416_v61 = vld [vmem:[%s5156_s2 + $0x188] sm:$0xff]  ;;  %v4716_v53 = vpack.c.bf16 %v1419_v30, %v1415_v24 }
 0x23c   :  { %3610 = vtanh.f32 %v4421_v7 }
 0x246   :  { %v3611_v11 = vpop.eup %3610 }
 0x247   :  { %v4424_v12 = vmul.f32 %v3611_v11, %v3609_v8  ;;  %v1383_v8 = vld [vmem:[%s5156_s2 + $0x80] sm:$0xff] }
 0x248   :  { %v1387_v11 = vld [vmem:[%s5156_s2 + $0xa0] sm:$0xff] }
 0x249   :  { %1010 = vmatmul.mubr.f32.vlgmr.msra.gmra.mrb[4].mxu0 %v4424_v12  ;;  %1081 = vmatmul.mubr.f32.vlgmr.msra.gmra.mrb[4].mxu1 %v4424_v12  ;;  %v4570_v17 = vpack.c.bf16 %v1387_v11, %v1383_v8  ;;  %v1422_v8 = vld [vmem:[%s5156_s2 + $0x1b8] sm:$0xff] }
 0x24a   :  { %1252 = vmatprep.mubr.f32.mxu0 %v3756_v3  ;;  %1323 = vmatprep.mubr.f32.mxu1 %v3756_v3 }
 0x24b   :  { %3134 = vmatpush1.bf16.msra.mxu0 %v4452_v47  ;;  %3166 = vmatpush1.bf16.msra.mxu1 %v4461_v56 }
 0x24c   :  { %3136 = vmatprep.subr.bf16.mxu0 %v4475_v39  ;;  %3168 = vmatprep.subr.bf16.mxu1 %v4486_v38 }
 0x24f   :  { %3138 = vmatpush1.bf16.msra.mxu0 %v4488_v41  ;;  %3170 = vmatpush1.bf16.msra.mxu1 %v4497_v51 }
 0x250   :  { %3140 = vmatprep.subr.bf16.mxu0 %v4091_v2  ;;  %3172 = vmatprep.subr.bf16.mxu1 %v4100_v6 }
 0x253   :  { %3142 = vmatpush1.bf16.msra.mxu0 %v4112_v10  ;;  %3174 = vmatpush1.bf16.msra.mxu1 %v4122_v13 }
 0x254   :  { %3144 = vmatprep.subr.bf16.mxu0 %v4132_v16  ;;  %3176 = vmatprep.subr.bf16.mxu1 %v4141_v19 }
 0x257   :  { %3146 = vmatpush1.bf16.msra.mxu0 %v4153_v23  ;;  %3178 = vmatpush1.bf16.msra.mxu1 %v4163_v26 }
 0x258   :  { %3148 = vmatprep.subr.bf16.mxu0 %v4173_v29  ;;  %3180 = vmatprep.subr.bf16.mxu1 %v4182_v32 }
 0x25b   :  { %3150 = vmatpush1.bf16.msra.mxu0 %v4194_v36  ;;  %3182 = vmatpush1.bf16.msra.mxu1 %v4204_v40 }
 0x25c   :  { %3152 = vmatprep.subr.bf16.mxu0 %v4214_v44  ;;  %3184 = vmatprep.subr.bf16.mxu1 %v4223_v48 }
 0x25f   :  { %3154 = vmatpush1.bf16.msra.mxu0 %v4235_v54  ;;  %3186 = vmatpush1.bf16.msra.mxu1 %v4245_v58 }
 0x260   :  { %3156 = vmatprep.subr.bf16.mxu0 %v4255_v62  ;;  %3188 = vmatprep.subr.bf16.mxu1 %v4264_v4 }
 0x263   :  { %3158 = vmatpush1.bf16.msra.mxu0 %v4276_v9  ;;  %3190 = vmatpush1.bf16.msra.mxu1 %v4286_v14 }
 0x264   :  { %3160 = vmatprep.subr.bf16.mxu0 %v4296_v18  ;;  %3192 = vmatprep.subr.bf16.mxu1 %v4305_v22 }
 0x267   :  { %3162 = vmatpush1.bf16.msra.mxu0 %v4311_v25  ;;  %3194 = vmatpush1.bf16.msra.mxu1 %v4315_v27 }
 0x268   :  { %3196 = vmatprep.subr.bf16.mxu0 %v4439_v21  ;;  %3228 = vmatprep.subr.bf16.mxu1 %v4450_v31 }
 0x31c   :  { %v1011_v2 = vpop.f32.mrb[4].mxu0  ;;  %v1082_v6 = vpop.f32.mrb[4].mxu1 }
 0x31d   :  { %v3519_v10 = vadd.f32 %v1011_v2, %v4365_v35  ;;  %v1013_v13 = vpop.f32.mrb[5].mxu0  ;;  %v1084_v16 = vpop.f32.mrb[5].mxu1  ;;  %v3535_v36 = vadd.f32 %v1082_v6, %v4374_v59  ;;  %v4615_v2 = vpack.c.bf16 %v1397_v49, %v1393_v46  ;;  %v1400_v6 = vld [vmem:[%s5156_s2 + $0x108] sm:$0xff]  ;;  %v4729_v46 = vpack.c.bf16 %v1421_v63, %v1417_v50 }
 0x31e   :  { %v3520_v19 = vadd.f32 %v1013_v13, %v4367_v37  ;;  %v3536_v29 = vadd.f32 %v1084_v16, %v4371_v52  ;;  %v1402_v13 = vld [vmem:[%s5156_s2 + $0x118] sm:$0xff]  ;;  %v4731_v49 = vpack.c.bf16 %v1428_v42, %v1424_v34 }
 0x31f   :  { %v2719_v23 = vmul.f32 -1.442695, %v3519_v10  ;;  %v1404_v10 = vld [vmem:[%s5156_s2 + $0x128] sm:$0xff] }
 0x320   :  { %v2720_v26 = vmul.f32 -1.442695, %v3520_v19  ;;  %v2721_v32 = vmul.f32 -1.442695, %v3536_v29  ;;  %v4629_v16 = vpack.c.bf16 %v1404_v10, %v1400_v6  ;;  %v1406_v19 = vld [vmem:[%s5156_s2 + $0x138] sm:$0xff] }
 0x321   :  { %3612 = vpow2.f32 %v2719_v23  ;;  %v1399_v23 = vld [vmem:[%s5156_s2 + $0x100] sm:$0xff]  ;;  %v4640_v29 = vpack.c.bf16 %v1406_v19, %v1402_v13  ;;  %v1426_v6 = vld [vmem:[%s5156_s2 + $0x1d8] sm:$0xff] }
 0x322   :  { %3614 = vpow2.f32 %v2720_v26  ;;  %v1403_v26 = vld [vmem:[%s5156_s2 + $0x120] sm:$0xff]  ;;  %v1430_v10 = vld [vmem:[%s5156_s2 + $0x1f8] sm:$0xff] }
 0x323   :  { %3616 = vpow2.f32 %v2721_v32  ;;  %v4642_v32 = vpack.c.bf16 %v1403_v26, %v1399_v23  ;;  %v1423_v13 = vld [vmem:[%s5156_s2 + $0x1c0] sm:$0xff]  ;;  %v4743_v19 = vpack.c.bf16 %v1430_v10, %v1426_v6  ;;  %v1425_v26 = vld [vmem:[%s5156_s2 + $0x1d0] sm:$0xff] }
 0x324   :  { %3618 = vtanh.f32 %v3535_v36  ;;  %v1401_v36 = vld [vmem:[%s5156_s2 + $0x110] sm:$0xff]  ;;  %v1427_v23 = vld [vmem:[%s5156_s2 + $0x1e0] sm:$0xff] }
 0x32b   :  { %v3613_v40 = vpop.eup %3612 }
 0x32c   :  { %v3615_v44 = vpop.eup %3614  ;;  %v1094_v48 = vadd.f32 1.0, %v3613_v40  ;;  %v1405_v40 = vld [vmem:[%s5156_s2 + $0x130] sm:$0xff] }
 0x32d   :  { %v1100_v54 = vadd.f32 1.0, %v3615_v44  ;;  %v3617_v58 = vpop.eup %3616  ;;  %v4651_v44 = vpack.c.bf16 %v1405_v40, %v1401_v36  ;;  %v1429_v36 = vld [vmem:[%s5156_s2 + $0x1f0] sm:$0xff]  ;;  %v4755_v40 = vpack.c.bf16 %v1427_v23, %v1423_v13 }
 0x32e   :  { %3620 = vrcp.f32 %v1094_v48  ;;  %v3619_v62 = vpop.eup %3618  ;;  %v1107_v18 = vadd.f32 1.0, %v3617_v58  ;;  %v1408_v48 = vld [vmem:[%s5156_s2 + $0x148] sm:$0xff]  ;;  %v1410_v58 = vld [vmem:[%s5156_s2 + $0x158] sm:$0xff] }
 0x32f   :  { %3622 = vrcp.f32 %v1100_v54  ;;  %v1412_v54 = vld [vmem:[%s5156_s2 + $0x168] sm:$0xff] }
 0x330   :  { %3624 = vrcp.f32 %v1107_v18 }
 0x338   :  { %v3621_v4 = vpop.eup %3620 }
 0x339   :  { %v3623_v9 = vpop.eup %3622  ;;  %v1111_v14 = vmul.f32 %v3621_v4, %v3619_v62  ;;  %v4664_v62 = vpack.c.bf16 %v1412_v54, %v1408_v48  ;;  %v1414_v4 = vld [vmem:[%s5156_s2 + $0x178] sm:$0xff]  ;;  %v4759_v48 = vpack.c.bf16 %v1429_v36, %v1425_v26 }
 0x33a   :  { %v1110_v22 = vmul.f32 %v3623_v9, %v4421_v7  ;;  %v3625_v27 = vpop.eup %3624  ;;  %v1390_v7 = vld [vmem:[%s5156_s2 + $0xb8] sm:$0xff]  ;;  %v1407_v9 = vld [vmem:[%s5156_s2 + $0x140] sm:$0xff]  ;;  %v4676_v18 = vpack.c.bf16 %v1414_v4, %v1410_v58 }
 0x33b   :  { %v4568_v15 = vpack.c.bf16 %v1390_v7, %v1386_v1  ;;  %v1420_v1 = vld [vmem:[%s5156_s2 + $0x1a8] sm:$0xff]  ;;  %v1418_v7 = vld [vmem:[%s5156_s2 + $0x198] sm:$0xff] }
 0x33c   :  { %v4533_v25 = vadd.f32 %v1111_v14, %v1110_v22  ;;  %v1411_v14 = vld [vmem:[%s5156_s2 + $0x160] sm:$0xff]  ;;  %v4702_v11 = vpack.c.bf16 %v1420_v1, %v1416_v61  ;;  %v4704_v20 = vpack.c.bf16 %v1422_v8, %v1418_v7 }
 0x33d   :  { %v4678_v22 = vpack.c.bf16 %v1411_v14, %v1407_v9 }
 0x33e   :  { %3626 = vtanh.f32 %v4533_v25 }
 0x348   :  { %v3627_v55 = vpop.eup %3626 }
 0x349   :  { %v4536_v57 = vmul.f32 %v3627_v55, %v3625_v27  ;;  %v1409_v27 = vld [vmem:[%s5156_s2 + $0x150] sm:$0xff] }
 0x34a   :  { %v1413_v55 = vld [vmem:[%s5156_s2 + $0x170] sm:$0xff] }
 0x34b   :  { %1253 = vmatmul.mubr.f32.vlgmr.msra.gmra.mrb[6].mxu0 %v4536_v57  ;;  %1324 = vmatmul.mubr.f32.vlgmr.msra.gmra.mrb[6].mxu1 %v4536_v57  ;;  %v4690_v0 = vpack.c.bf16 %v1413_v55, %v1409_v27 }
 0x34c   :  { %3198 = vmatpush1.bf16.msra.mxu0 %v4452_v47  ;;  %3230 = vmatpush1.bf16.msra.mxu1 %v4461_v56 }
 0x34d   :  { %3200 = vmatprep.subr.bf16.mxu0 %v4475_v39  ;;  %3232 = vmatprep.subr.bf16.mxu1 %v4486_v38 }
 0x34e   :  { %1495 = vmatprep.mubr.f32.mxu0 %v3756_v3  ;;  %1566 = vmatprep.mubr.f32.mxu1 %v3756_v3 }
 0x350   :  { %3202 = vmatpush1.bf16.msra.mxu0 %v4488_v41  ;;  %3234 = vmatpush1.bf16.msra.mxu1 %v4497_v51 }
 0x351   :  { %3204 = vmatprep.subr.bf16.mxu0 %v4557_v5  ;;  %3236 = vmatprep.subr.bf16.mxu1 %v4568_v15 }
 0x354   :  { %3206 = vmatpush1.bf16.msra.mxu0 %v4570_v17  ;;  %3238 = vmatpush1.bf16.msra.mxu1 %v4579_v28 }
 0x355   :  { %3208 = vmatprep.subr.bf16.mxu0 %v4593_v60  ;;  %3240 = vmatprep.subr.bf16.mxu1 %v4604_v43 }
 0x358   :  { %3210 = vmatpush1.bf16.msra.mxu0 %v4606_v45  ;;  %3242 = vmatpush1.bf16.msra.mxu1 %v4615_v2 }
 0x359   :  { %3212 = vmatprep.subr.bf16.mxu0 %v4629_v16  ;;  %3244 = vmatprep.subr.bf16.mxu1 %v4640_v29 }
 0x35c   :  { %3214 = vmatpush1.bf16.msra.mxu0 %v4642_v32  ;;  %3246 = vmatpush1.bf16.msra.mxu1 %v4651_v44 }
 0x35d   :  { %3216 = vmatprep.subr.bf16.mxu0 %v4664_v62  ;;  %3248 = vmatprep.subr.bf16.mxu1 %v4676_v18 }
 0x360   :  { %3218 = vmatpush1.bf16.msra.mxu0 %v4678_v22  ;;  %3250 = vmatpush1.bf16.msra.mxu1 %v4690_v0 }
 0x361   :  { %3220 = vmatprep.subr.bf16.mxu0 %v4702_v11  ;;  %3252 = vmatprep.subr.bf16.mxu1 %v4704_v20 }
 0x364   :  { %3222 = vmatpush1.bf16.msra.mxu0 %v4716_v53  ;;  %3254 = vmatpush1.bf16.msra.mxu1 %v4729_v46 }
 0x365   :  { %3224 = vmatprep.subr.bf16.mxu0 %v4731_v49  ;;  %3256 = vmatprep.subr.bf16.mxu1 %v4743_v19 }
 0x368   :  { %3226 = vmatpush1.bf16.msra.mxu0 %v4755_v40  ;;  %3258 = vmatpush1.bf16.msra.mxu1 %v4759_v48 }
 0x369   :  { %3260 = vmatprep.subr.bf16.mxu0 %v4439_v21  ;;  %3292 = vmatprep.subr.bf16.mxu1 %v4450_v31 }
 0x41e   :  { %v1254_v54 = vpop.f32.mrb[6].mxu0  ;;  %v1325_v58 = vpop.f32.mrb[6].mxu1 }
 0x41f   :  { %v3521_v4 = vadd.f32 %v1254_v54, %v4365_v35  ;;  %v1256_v9 = vpop.f32.mrb[7].mxu0  ;;  %v1327_v14 = vpop.f32.mrb[7].mxu1  ;;  %v3537_v8 = vadd.f32 %v1325_v58, %v4374_v59 }
 0x420   :  { %v3522_v27 = vadd.f32 %v1256_v9, %v4367_v37  ;;  %v3538_v1 = vadd.f32 %v1327_v14, %v4371_v52 }
 0x421   :  { %v2722_v55 = vmul.f32 -1.442695, %v3521_v4 }
 0x422   :  { %v2723_v61 = vmul.f32 -1.442695, %v3522_v27  ;;  %v2724_v7 = vmul.f32 -1.442695, %v3538_v1 }
 0x423   :  { %3628 = vpow2.f32 %v2722_v55 }
 0x424   :  { %3630 = vpow2.f32 %v2723_v61 }
 0x425   :  { %3632 = vpow2.f32 %v2724_v7 }
 0x426   :  { %3634 = vtanh.f32 %v3537_v8 }
 0x42d   :  { %v3629_v24 = vpop.eup %3628 }
 0x42e   :  { %v3631_v30 = vpop.eup %3630  ;;  %v1337_v50 = vadd.f32 1.0, %v3629_v24 }
 0x42f   :  { %v1343_v63 = vadd.f32 1.0, %v3631_v30  ;;  %v3633_v34 = vpop.eup %3632 }
 0x430   :  { %3636 = vrcp.f32 %v1337_v50  ;;  %v3635_v42 = vpop.eup %3634  ;;  %v1350_v23 = vadd.f32 1.0, %v3633_v34 }
 0x431   :  { %3638 = vrcp.f32 %v1343_v63 }
 0x432   :  { %3640 = vrcp.f32 %v1350_v23 }
 0x43a   :  { %v3637_v6 = vpop.eup %3636 }
 0x43b   :  { %v3639_v10 = vpop.eup %3638  ;;  %v1354_v13 = vmul.f32 %v3637_v6, %v3635_v42 }
 0x43c   :  { %v1353_v26 = vmul.f32 %v3639_v10, %v4533_v25  ;;  %v3641_v54 = vpop.eup %3640 }
 0x43e   :  { %v4771_v36 = vadd.f32 %v1354_v13, %v1353_v26 }
 0x440   :  { %3642 = vtanh.f32 %v4771_v36 }
 0x44a   :  { %v3643_v58 = vpop.eup %3642 }
 0x44b   :  { %v4774_v4 = vmul.f32 %v3643_v58, %v3641_v54 }
 0x44d   :  { %1496 = vmatmul.mubr.f32.vlgmr.msra.gmra.mrb[8].mxu0 %v4774_v4  ;;  %1567 = vmatmul.mubr.f32.vlgmr.msra.gmra.mrb[8].mxu1 %v4774_v4 }
 0x44e   :  { %3262 = vmatpush1.bf16.msra.mxu0 %v4452_v47  ;;  %3294 = vmatpush1.bf16.msra.mxu1 %v4461_v56 }
 0x44f   :  { %3264 = vmatprep.subr.bf16.mxu0 %v4475_v39  ;;  %3296 = vmatprep.subr.bf16.mxu1 %v4486_v38 }
 0x450   :  { %1738 = vmatprep.mubr.f32.mxu0 %v3756_v3  ;;  %1809 = vmatprep.mubr.f32.mxu1 %v3756_v3 }
 0x452   :  { %3266 = vmatpush1.bf16.msra.mxu0 %v4488_v41  ;;  %3298 = vmatpush1.bf16.msra.mxu1 %v4497_v51 }
 0x453   :  { %3268 = vmatprep.subr.bf16.mxu0 %v4557_v5  ;;  %3300 = vmatprep.subr.bf16.mxu1 %v4568_v15 }
 0x456   :  { %3270 = vmatpush1.bf16.msra.mxu0 %v4570_v17  ;;  %3302 = vmatpush1.bf16.msra.mxu1 %v4579_v28 }
 0x457   :  { %3272 = vmatprep.subr.bf16.mxu0 %v4593_v60  ;;  %3304 = vmatprep.subr.bf16.mxu1 %v4604_v43 }
 0x45a   :  { %3274 = vmatpush1.bf16.msra.mxu0 %v4606_v45  ;;  %3306 = vmatpush1.bf16.msra.mxu1 %v4615_v2 }
 0x45b   :  { %3276 = vmatprep.subr.bf16.mxu0 %v4629_v16  ;;  %3308 = vmatprep.subr.bf16.mxu1 %v4640_v29 }
 0x45e   :  { %3278 = vmatpush1.bf16.msra.mxu0 %v4642_v32  ;;  %3310 = vmatpush1.bf16.msra.mxu1 %v4651_v44 }
 0x45f   :  { %3280 = vmatprep.subr.bf16.mxu0 %v4664_v62  ;;  %3312 = vmatprep.subr.bf16.mxu1 %v4676_v18 }
 0x462   :  { %3282 = vmatpush1.bf16.msra.mxu0 %v4678_v22  ;;  %3314 = vmatpush1.bf16.msra.mxu1 %v4690_v0 }
 0x463   :  { %3284 = vmatprep.subr.bf16.mxu0 %v4702_v11  ;;  %3316 = vmatprep.subr.bf16.mxu1 %v4704_v20 }
 0x466   :  { %3286 = vmatpush1.bf16.msra.mxu0 %v4716_v53  ;;  %3318 = vmatpush1.bf16.msra.mxu1 %v4729_v46 }
 0x467   :  { %3288 = vmatprep.subr.bf16.mxu0 %v4731_v49  ;;  %3320 = vmatprep.subr.bf16.mxu1 %v4743_v19 }
 0x46a   :  { %3290 = vmatpush1.bf16.msra.mxu0 %v4755_v40  ;;  %3322 = vmatpush1.bf16.msra.mxu1 %v4759_v48 }
 0x46b   :  { %3324 = vmatprep.subr.bf16.mxu0 %v4439_v21  ;;  %3356 = vmatprep.subr.bf16.mxu1 %v4450_v31 }
 0x520   :  { %v1497_v25 = vpop.f32.mrb[8].mxu0  ;;  %v1568_v9 = vpop.f32.mrb[8].mxu1 }
 0x521   :  { %v3523_v14 = vadd.f32 %v1497_v25, %v4365_v35  ;;  %v1499_v27 = vpop.f32.mrb[9].mxu0  ;;  %v1570_v55 = vpop.f32.mrb[9].mxu1  ;;  %v3539_v30 = vadd.f32 %v1568_v9, %v4374_v59 }
 0x522   :  { %v3524_v61 = vadd.f32 %v1499_v27, %v4367_v37  ;;  %v3540_v8 = vadd.f32 %v1570_v55, %v4371_v52 }
 0x523   :  { %v2725_v1 = vmul.f32 -1.442695, %v3523_v14 }
 0x524   :  { %v2726_v7 = vmul.f32 -1.442695, %v3524_v61  ;;  %v2727_v24 = vmul.f32 -1.442695, %v3540_v8 }
 0x525   :  { %3644 = vpow2.f32 %v2725_v1 }
 0x526   :  { %3646 = vpow2.f32 %v2726_v7 }
 0x527   :  { %3648 = vpow2.f32 %v2727_v24 }
 0x528   :  { %3650 = vtanh.f32 %v3539_v30 }
 0x52f   :  { %v3645_v21 = vpop.eup %3644 }
 0x530   :  { %v3647_v50 = vpop.eup %3646  ;;  %v1580_v31 = vadd.f32 1.0, %v3645_v21 }
 0x531   :  { %v1586_v63 = vadd.f32 1.0, %v3647_v50  ;;  %v3649_v34 = vpop.eup %3648 }
 0x532   :  { %3652 = vrcp.f32 %v1580_v31  ;;  %v3651_v42 = vpop.eup %3650  ;;  %v1593_v23 = vadd.f32 1.0, %v3649_v34 }
 0x533   :  { %3654 = vrcp.f32 %v1586_v63 }
 0x534   :  { %3656 = vrcp.f32 %v1593_v23 }
 0x53c   :  { %v3653_v6 = vpop.eup %3652 }
 0x53d   :  { %v3655_v10 = vpop.eup %3654  ;;  %v1597_v13 = vmul.f32 %v3653_v6, %v3651_v42 }
 0x53e   :  { %v1596_v26 = vmul.f32 %v3655_v10, %v4771_v36  ;;  %v3657_v58 = vpop.eup %3656 }
 0x540   :  { %v4817_v54 = vadd.f32 %v1597_v13, %v1596_v26  ;;  %v2097_v26 = vld [vmem:[%s5156_s2 + $0x8] sm:$0xff] }
 0x542   :  { %3658 = vtanh.f32 %v4817_v54 }
 0x54c   :  { %v3659_v25 = vpop.eup %3658 }
 0x54d   :  { %v4820_v9 = vmul.f32 %v3659_v25, %v3657_v58  ;;  %v2096_v25 = vld [vmem:[%s5156_s2] sm:$0xff] }
 0x54f   :  { %1739 = vmatmul.mubr.f32.vlgmr.msra.gmra.mrb[10].mxu0 %v4820_v9  ;;  %1810 = vmatmul.mubr.f32.vlgmr.msra.gmra.mrb[10].mxu1 %v4820_v9 }
 0x550   :  { %3326 = vmatpush1.bf16.msra.mxu0 %v4452_v47  ;;  %3358 = vmatpush1.bf16.msra.mxu1 %v4461_v56 }
 0x551   :  { %3328 = vmatprep.subr.bf16.mxu0 %v4475_v39  ;;  %3360 = vmatprep.subr.bf16.mxu1 %v4486_v38 }
 0x552   :  { %1981 = vmatprep.mubr.f32.mxu0 %v3756_v3  ;;  %2052 = vmatprep.mubr.f32.mxu1 %v3756_v3 }
 0x554   :  { %3330 = vmatpush1.bf16.msra.mxu0 %v4488_v41  ;;  %3362 = vmatpush1.bf16.msra.mxu1 %v4497_v51 }
 0x555   :  { %3332 = vmatprep.subr.bf16.mxu0 %v4557_v5  ;;  %3364 = vmatprep.subr.bf16.mxu1 %v4568_v15 }
 0x558   :  { %3334 = vmatpush1.bf16.msra.mxu0 %v4570_v17  ;;  %3366 = vmatpush1.bf16.msra.mxu1 %v4579_v28 }
 0x559   :  { %3336 = vmatprep.subr.bf16.mxu0 %v4593_v60  ;;  %3368 = vmatprep.subr.bf16.mxu1 %v4604_v43 }
 0x55c   :  { %3338 = vmatpush1.bf16.msra.mxu0 %v4606_v45  ;;  %3370 = vmatpush1.bf16.msra.mxu1 %v4615_v2 }
 0x55d   :  { %3340 = vmatprep.subr.bf16.mxu0 %v4629_v16  ;;  %3372 = vmatprep.subr.bf16.mxu1 %v4640_v29 }
 0x560   :  { %3342 = vmatpush1.bf16.msra.mxu0 %v4642_v32  ;;  %3374 = vmatpush1.bf16.msra.mxu1 %v4651_v44 }
 0x561   :  { %3344 = vmatprep.subr.bf16.mxu0 %v4664_v62  ;;  %3376 = vmatprep.subr.bf16.mxu1 %v4676_v18 }
 0x564   :  { %3346 = vmatpush1.bf16.msra.mxu0 %v4678_v22  ;;  %3378 = vmatpush1.bf16.msra.mxu1 %v4690_v0 }
 0x565   :  { %3348 = vmatprep.subr.bf16.mxu0 %v4702_v11  ;;  %3380 = vmatprep.subr.bf16.mxu1 %v4704_v20 }
 0x568   :  { %3350 = vmatpush1.bf16.msra.mxu0 %v4716_v53  ;;  %3382 = vmatpush1.bf16.msra.mxu1 %v4729_v46 }
 0x569   :  { %3352 = vmatprep.subr.bf16.mxu0 %v4731_v49  ;;  %3384 = vmatprep.subr.bf16.mxu1 %v4743_v19 }
 0x56c   :  { %3354 = vmatpush1.bf16.msra.mxu0 %v4755_v40  ;;  %3386 = vmatpush1.bf16.msra.mxu1 %v4759_v48 }
 0x622   :  { %v1740_v47 = vpop.f32.mrb[10].mxu0  ;;  %v1811_v56 = vpop.f32.mrb[10].mxu1 }
 0x623   :  { %v3525_v39 = vadd.f32 %v1740_v47, %v4365_v35  ;;  %v1742_v38 = vpop.f32.mrb[11].mxu0  ;;  %v1813_v41 = vpop.f32.mrb[11].mxu1  ;;  %v3541_v61 = vadd.f32 %v1811_v56, %v4374_v59  ;;  %v2100_v47 = vld [vmem:[%s5156_s2 + $0x20] sm:$0xff] }
 0x624   :  { %v3526_v51 = vadd.f32 %v1742_v38, %v4367_v37  ;;  %v3542_v27 = vadd.f32 %v1813_v41, %v4371_v52  ;;  %v3389_v56 = vpack.c.bf16 %v2100_v47, %v2096_v25  ;;  %v2098_v38 = vld [vmem:[%s5156_s2 + $0x10] sm:$0xff]  ;;  %v2347_v25 = vld [vmem:[%s5159_s4 + $0x28] sm:$0xff] }
 0x625   :  { %v2728_v36 = vmul.f32 -1.442695, %v3525_v39  ;;  %v2103_v39 = vld [vmem:[%s5156_s2 + $0x38] sm:$0xff]  ;;  %v2102_v41 = vld [vmem:[%s5156_s2 + $0x30] sm:$0xff] }
 0x626   :  { %v2729_v14 = vmul.f32 -1.442695, %v3526_v51  ;;  %v2730_v55 = vmul.f32 -1.442695, %v3542_v27  ;;  %v2109_v27 = vld [vmem:[%s5156_s2 + $0x68] sm:$0xff] }
 0x627   :  { %3660 = vpow2.f32 %v2728_v36  ;;  %v3421_v36 = vpack.c.bf16 %v2102_v41, %v2098_v38  ;;  %v2350_v38 = vld [vmem:[%s5159_s4 + $0x40] sm:$0xff] }
 0x628   :  { %3662 = vpow2.f32 %v2729_v14  ;;  %v2105_v14 = vld [vmem:[%s5156_s2 + $0x48] sm:$0xff] }
 0x629   :  { %3664 = vpow2.f32 %v2730_v55  ;;  %v3391_v55 = vpack.c.bf16 %v2109_v27, %v2105_v14  ;;  %v2354_v27 = vld [vmem:[%s5159_s4 + $0x60] sm:$0xff] }
 0x62a   :  { %3666 = vtanh.f32 %v3541_v61  ;;  %v2104_v61 = vld [vmem:[%s5156_s2 + $0x40] sm:$0xff] }
 0x631   :  { %v3661_v1 = vpop.eup %3660 }
 0x632   :  { %v3663_v7 = vpop.eup %3662  ;;  %v1823_v8 = vadd.f32 1.0, %v3661_v1  ;;  %v2108_v1 = vld [vmem:[%s5156_s2 + $0x60] sm:$0xff] }
 0x633   :  { %v1829_v24 = vadd.f32 1.0, %v3663_v7  ;;  %v3665_v30 = vpop.eup %3664  ;;  %v2107_v7 = vld [vmem:[%s5156_s2 + $0x58] sm:$0xff] }
 0x634   :  { %3668 = vrcp.f32 %v1823_v8  ;;  %v3667_v21 = vpop.eup %3666  ;;  %v1836_v34 = vadd.f32 1.0, %v3665_v30  ;;  %v3393_v8 = vpack.c.bf16 %v2108_v1, %v2104_v61  ;;  %v2106_v30 = vld [vmem:[%s5156_s2 + $0x50] sm:$0xff] }
 0x635   :  { %3670 = vrcp.f32 %v1829_v24  ;;  %v2111_v24 = vld [vmem:[%s5156_s2 + $0x78] sm:$0xff]  ;;  %v2356_v1 = vld [vmem:[%s5159_s4 + $0x70] sm:$0xff] }
 0x636   :  { %3672 = vrcp.f32 %v1836_v34 }
 0x63e   :  { %v3669_v50 = vpop.eup %3668 }
 0x63f   :  { %v3671_v31 = vpop.eup %3670  ;;  %v1840_v63 = vmul.f32 %v3669_v50, %v3667_v21  ;;  %v2110_v21 = vld [vmem:[%s5156_s2 + $0x70] sm:$0xff]  ;;  %v3423_v50 = vpack.c.bf16 %v2111_v24, %v2107_v7  ;;  %v2357_v7 = vld [vmem:[%s5159_s4 + $0x78] sm:$0xff]  ;;  %v2478_v24 = vld [vmem:[%s5160_s6] sm:$0xff] }
 0x640   :  { %v1839_v42 = vmul.f32 %v3671_v31, %v4817_v54  ;;  %v3673_v10 = vpop.eup %3672  ;;  %v2101_v54 = vld [vmem:[%s5156_s2 + $0x28] sm:$0xff]  ;;  %v3425_v31 = vpack.c.bf16 %v2110_v21, %v2106_v30 }
 0x641   :  { %v3387_v58 = vpack.c.bf16 %v2101_v54, %v2097_v26  ;;  %v2479_v30 = vld [vmem:[%s5160_s6 + $0x8] sm:$0xff] }
 0x642   :  { %v4861_v6 = vadd.f32 %v1840_v63, %v1839_v42  ;;  %v2344_v42 = vld [vmem:[%s5159_s4 + $0x10] sm:$0xff]  ;;  %v3483_v21 = vpack.c.bf16 %v2479_v30, %v2478_v24 }
 0x643   :  { %3388 = vmatprep.subr.bf16.mxu0 %v3387_v58 }
 0x644   :  { %3674 = vtanh.f32 %v4861_v6 }
 0x64e   :  { %v3675_v13 = vpop.eup %3674 }
 0x64f   :  { %v4864_v23 = vmul.f32 %v3675_v13, %v3673_v10  ;;  %v2345_v10 = vld [vmem:[%s5159_s4 + $0x18] sm:$0xff] }
 0x650   :  { %v3455_v58 = vpack.c.bf16 %v2345_v10, %v2344_v42 }
 0x651   :  { %1982 = vmatmul.mubr.f32.vlgmr.msra.gmra.mrb[12].mxu0 %v4864_v23  ;;  %2053 = vmatmul.mubr.f32.vlgmr.msra.gmra.mrb[12].mxu1 %v4864_v23 }
 0x652   :  { %2224 = vmatprep.mubr.f32.mxu0 %v3756_v3  ;;  %2295 = vmatprep.mubr.f32.mxu1 %v3756_v3  ;;  %v2099_v3 = vld [vmem:[%s5156_s2 + $0x18] sm:$0xff] }
 0x653   :  { %v3419_v51 = vpack.c.bf16 %v2103_v39, %v2099_v3  ;;  %3390 = vmatpush1.bf16.msra.mxu0 %v3389_v56  ;;  %v2348_v3 = vld [vmem:[%s5159_s4 + $0x30] sm:$0xff]  ;;  %v2349_v56 = vld [vmem:[%s5159_s4 + $0x38] sm:$0xff] }
 0x654   :  { %3392 = vmatprep.subr.bf16.mxu0 %v3391_v55  ;;  %v3463_v39 = vpack.c.bf16 %v2349_v56, %v2348_v3  ;;  %v2355_v55 = vld [vmem:[%s5159_s4 + $0x68] sm:$0xff] }
 0x655   :  { %3420 = vmatprep.subr.bf16.mxu1 %v3419_v51  ;;  %v2352_v51 = vld [vmem:[%s5159_s4 + $0x50] sm:$0xff]  ;;  %v3475_v61 = vpack.c.bf16 %v2355_v55, %v2354_v27 }
 0x656   :  { %3422 = vmatpush1.bf16.msra.mxu1 %v3421_v36  ;;  %v2353_v36 = vld [vmem:[%s5159_s4 + $0x58] sm:$0xff] }
 0x657   :  { %3394 = vmatpush1.bf16.msra.mxu0 %v3393_v8  ;;  %3424 = vmatprep.subr.bf16.mxu1 %v3423_v50  ;;  %v3471_v14 = vpack.c.bf16 %v2353_v36, %v2352_v51  ;;  %v3479_v8 = vpack.c.bf16 %v2357_v7, %v2356_v1 }
 0x658   :  { %3396 = vmatprep.subr.bf16.mxu0 %v4557_v5  ;;  %v2342_v5 = vld [vmem:[%s5159_s4] sm:$0xff] }
 0x65a   :  { %3426 = vmatpush1.bf16.msra.mxu1 %v3425_v31  ;;  %v2484_v31 = vld [vmem:[%s5160_s6 + $0x30] sm:$0xff] }
 0x65b   :  { %3428 = vmatprep.subr.bf16.mxu1 %v4568_v15  ;;  %3398 = vmatpush1.bf16.msra.mxu0 %v4570_v17  ;;  %v2343_v15 = vld [vmem:[%s5159_s4 + $0x8] sm:$0xff] }
 0x65c   :  { %3400 = vmatprep.subr.bf16.mxu0 %v4593_v60  ;;  %v3451_v17 = vpack.c.bf16 %v2343_v15, %v2342_v5  ;;  %v2485_v5 = vld [vmem:[%s5160_s6 + $0x38] sm:$0xff] }
 0x65d   :  { %v3495_v15 = vpack.c.bf16 %v2485_v5, %v2484_v31 }
 0x65e   :  { %3430 = vmatpush1.bf16.msra.mxu1 %v4579_v28 }
 0x65f   :  { %3432 = vmatprep.subr.bf16.mxu1 %v4604_v43  ;;  %3402 = vmatpush1.bf16.msra.mxu0 %v4606_v45 }
 0x660   :  { %3404 = vmatprep.subr.bf16.mxu0 %v4629_v16 }
 0x662   :  { %3434 = vmatpush1.bf16.msra.mxu1 %v4615_v2 }
 0x663   :  { %3436 = vmatprep.subr.bf16.mxu1 %v4640_v29  ;;  %3406 = vmatpush1.bf16.msra.mxu0 %v4642_v32 }
 0x664   :  { %3408 = vmatprep.subr.bf16.mxu0 %v4664_v62 }
 0x666   :  { %3438 = vmatpush1.bf16.msra.mxu1 %v4651_v44 }
 0x667   :  { %3440 = vmatprep.subr.bf16.mxu1 %v4676_v18  ;;  %3410 = vmatpush1.bf16.msra.mxu0 %v4678_v22 }
 0x668   :  { %3412 = vmatprep.subr.bf16.mxu0 %v4702_v11 }
 0x66a   :  { %3442 = vmatpush1.bf16.msra.mxu1 %v4690_v0 }
 0x66b   :  { %3444 = vmatprep.subr.bf16.mxu1 %v4704_v20  ;;  %3414 = vmatpush1.bf16.msra.mxu0 %v4716_v53 }
 0x66c   :  { %3416 = vmatprep.subr.bf16.mxu0 %v4731_v49 }
 0x66e   :  { %3446 = vmatpush1.bf16.msra.mxu1 %v4729_v46 }
 0x66f   :  { %3448 = vmatprep.subr.bf16.mxu1 %v4743_v19  ;;  %3418 = vmatpush1.bf16.msra.mxu0 %v4755_v40 }
 0x670   :  { %3452 = vmatprep.subr.bf16.mxu0 %v3451_v17 }
 0x672   :  { %3450 = vmatpush1.bf16.msra.mxu1 %v4759_v48 }
 0x673   :  { %3484 = vmatprep.subr.bf16.mxu1 %v3483_v21 }
 0x724   :  { %v1983_v28 = vpop.f32.mrb[12].mxu0  ;;  %v2054_v60 = vpop.f32.mrb[12].mxu1 }
 0x725   :  { %v3527_v43 = vadd.f32 %v1983_v28, %v4365_v35  ;;  %v1985_v45 = vpop.f32.mrb[13].mxu0  ;;  %v2056_v2 = vpop.f32.mrb[13].mxu1  ;;  %v3543_v18 = vadd.f32 %v2054_v60, %v4374_v59  ;;  %v2487_v28 = vld [vmem:[%s5160_s6 + $0x48] sm:$0xff] }
 0x726   :  { %v3528_v16 = vadd.f32 %v1985_v45, %v4367_v37  ;;  %v3544_v44 = vadd.f32 %v2056_v2, %v4371_v52  ;;  %v2489_v45 = vld [vmem:[%s5160_s6 + $0x58] sm:$0xff] }
 0x727   :  { %v2731_v29 = vmul.f32 -1.442695, %v3527_v43  ;;  %v2488_v43 = vld [vmem:[%s5160_s6 + $0x50] sm:$0xff] }
 0x728   :  { %v2732_v32 = vmul.f32 -1.442695, %v3528_v16  ;;  %v2733_v62 = vmul.f32 -1.442695, %v3544_v44  ;;  %v3503_v2 = vpack.c.bf16 %v2489_v45, %v2488_v43  ;;  %v2490_v16 = vld [vmem:[%s5160_s6 + $0x60] sm:$0xff]  ;;  %v2492_v44 = vld [vmem:[%s5160_s6 + $0x70] sm:$0xff] }
 0x729   :  { %3676 = vpow2.f32 %v2731_v29  ;;  %v2491_v29 = vld [vmem:[%s5160_s6 + $0x68] sm:$0xff] }
 0x72a   :  { %3678 = vpow2.f32 %v2732_v32  ;;  %v3507_v32 = vpack.c.bf16 %v2491_v29, %v2490_v16 }
 0x72b   :  { %3680 = vpow2.f32 %v2733_v62  ;;  %v2493_v62 = vld [vmem:[%s5160_s6 + $0x78] sm:$0xff] }
 0x72c   :  { %3682 = vtanh.f32 %v3543_v18  ;;  %v3511_v18 = vpack.c.bf16 %v2493_v62, %v2492_v44 }
 0x733   :  { %v3677_v22 = vpop.eup %3676 }
 0x734   :  { %v3679_v0 = vpop.eup %3678  ;;  %v2066_v11 = vadd.f32 1.0, %v3677_v22 }
 0x735   :  { %v2072_v20 = vadd.f32 1.0, %v3679_v0  ;;  %v3681_v53 = vpop.eup %3680 }
 0x736   :  { %3684 = vrcp.f32 %v2066_v11  ;;  %v3683_v46 = vpop.eup %3682  ;;  %v2079_v48 = vadd.f32 1.0, %v3681_v53 }
 0x737   :  { %3686 = vrcp.f32 %v2072_v20 }
 0x738   :  { %3688 = vrcp.f32 %v2079_v48 }
 0x740   :  { %v3685_v49 = vpop.eup %3684 }
 0x741   :  { %v3687_v19 = vpop.eup %3686  ;;  %v2083_v40 = vmul.f32 %v3685_v49, %v3683_v46 }
 0x742   :  { %v2082_v63 = vmul.f32 %v3687_v19, %v4861_v6  ;;  %v3689_v13 = vpop.eup %3688  ;;  %v2346_v6 = vld [vmem:[%s5159_s4 + $0x20] sm:$0xff] }
 0x743   :  { %v3459_v47 = vpack.c.bf16 %v2347_v25, %v2346_v6 }
 0x744   :  { %v4953_v34 = vadd.f32 %v2083_v40, %v2082_v63 }
 0x746   :  { %3690 = vtanh.f32 %v4953_v34 }
 0x750   :  { %v3691_v26 = vpop.eup %3690 }
 0x751   :  { %v2086_v54 = vmul.f32 %v3691_v26, %v3689_v13 }
 0x753   :  { %2225 = vmatmul.mubr.f32.vlgmr.msra.gmra.mrb[14].mxu0 %v2086_v54  ;;  %2296 = vmatmul.mubr.f32.vlgmr.msra.gmra.mrb[14].mxu1 %v2086_v54 }
 0x754   :  { %3454 = vmatpush3.bf16.msra.mxu0 %v3451_v17  ;;  %2819 = vmatprep.mubr.f32.mxu0 %v4380_v33  ;;  %v2351_v33 = vld [vmem:[%s5159_s4 + $0x48] sm:$0xff]  ;;  %v2486_v17 = vld [vmem:[%s5160_s6 + $0x40] sm:$0xff] }
 0x755   :  { %3456 = vmatprep.subr.bf16.mxu0 %v3455_v58  ;;  %v3467_v41 = vpack.c.bf16 %v2351_v33, %v2350_v38  ;;  %3486 = vmatpush3.bf16.msra.mxu1 %v3483_v21  ;;  %v3499_v60 = vpack.c.bf16 %v2487_v28, %v2486_v17 }
 0x758   :  { %3458 = vmatpush3.bf16.msra.mxu0 %v3455_v58 }
 0x759   :  { %3460 = vmatprep.subr.bf16.mxu0 %v3459_v47 }
 0x75c   :  { %3462 = vmatpush3.bf16.msra.mxu0 %v3459_v47 }
 0x75d   :  { %3464 = vmatprep.subr.bf16.mxu0 %v3463_v39 }
 0x760   :  { %3466 = vmatpush3.bf16.msra.mxu0 %v3463_v39 }
 0x761   :  { %3468 = vmatprep.subr.bf16.mxu0 %v3467_v41 }
 0x764   :  { %3470 = vmatpush3.bf16.msra.mxu0 %v3467_v41 }
 0x765   :  { %3472 = vmatprep.subr.bf16.mxu0 %v3471_v14 }
 0x768   :  { %3474 = vmatpush3.bf16.msra.mxu0 %v3471_v14 }
 0x769   :  { %3476 = vmatprep.subr.bf16.mxu0 %v3475_v61 }
 0x76c   :  { %3478 = vmatpush3.bf16.msra.mxu0 %v3475_v61 }
 0x76d   :  { %3480 = vmatprep.subr.bf16.mxu0 %v3479_v8 }
 0x770   :  { %3482 = vmatpush3.bf16.msra.mxu0 %v3479_v8 }
 0x773   :  { %2820 = vmatmul.mubr.f32.vlgmr.msra.gmra.mrb[16].mxu0 %v4424_v12  ;;  %v2480_v12 = vld [vmem:[%s5160_s6 + $0x10] sm:$0xff] }
 0x774   :  { %2822 = vmatprep.mubr.f32.mxu0 %v4536_v57  ;;  %v2481_v57 = vld [vmem:[%s5160_s6 + $0x18] sm:$0xff] }
 0x777   :  { %2823 = vmatmul.mubr.f32.gmra.mrb[18].mxu0 %v4774_v4  ;;  %v3487_v4 = vpack.c.bf16 %v2481_v57, %v2480_v12 }
 0x778   :  { %2825 = vmatprep.mubr.f32.mxu0 %v4820_v9  ;;  %v2482_v9 = vld [vmem:[%s5160_s6 + $0x20] sm:$0xff] }
 0x779   :  { %3488 = vmatprep.subr.bf16.mxu1 %v3487_v4 }
 0x77a   :  { %3490 = vmatpush3.bf16.msra.mxu1 %v3487_v4  ;;  %v2738_v4 = vld [vmem:[%s5162_s7] ss:$0 sm:$0xff] }
 0x77b   :  { %2826 = vmatmul.mubr.f32.gmra.mrb[20].mxu0 %v4864_v23  ;;  %v2483_v23 = vld [vmem:[%s5160_s6 + $0x28] sm:$0xff] }
 0x77c   :  { %2828 = vmatprep.mubr.f32.mxu0 %v2086_v54  ;;  %v3491_v50 = vpack.c.bf16 %v2483_v23, %v2482_v9 }
 0x77e   :  { %3492 = vmatprep.subr.bf16.mxu1 %v3491_v50 }
 0x77f   :  { %3494 = vmatpush3.bf16.msra.mxu1 %v3491_v50 }
 0x780   :  { %3496 = vmatprep.subr.bf16.mxu1 %v3495_v15 }
 0x783   :  { %3498 = vmatpush3.bf16.msra.mxu1 %v3495_v15 }
 0x784   :  { %3500 = vmatprep.subr.bf16.mxu1 %v3499_v60 }
 0x787   :  { %3502 = vmatpush3.bf16.msra.mxu1 %v3499_v60 }
 0x788   :  { %3504 = vmatprep.subr.bf16.mxu1 %v3503_v2 }
 0x78b   :  { %3506 = vmatpush3.bf16.msra.mxu1 %v3503_v2 }
 0x78c   :  { %3508 = vmatprep.subr.bf16.mxu1 %v3507_v32 }
 0x78f   :  { %3510 = vmatpush3.bf16.msra.mxu1 %v3507_v32 }
 0x790   :  { %3512 = vmatprep.subr.bf16.mxu1 %v3511_v18 }
 0x793   :  { %3514 = vmatpush3.bf16.msra.mxu1 %v3511_v18 }
 0x826   :  { %v2226_v22 = vpop.f32.mrb[14].mxu0  ;;  %v2297_v0 = vpop.f32.mrb[14].mxu1 }
 0x827   :  { %v3529_v11 = vadd.f32 %v2226_v22, %v4365_v35  ;;  %v2228_v20 = vpop.f32.mrb[15].mxu0  ;;  %v2299_v53 = vpop.f32.mrb[15].mxu1  ;;  %v3545_v63 = vadd.f32 %v2297_v0, %v4374_v59 }
 0x828   :  { %v3530_v46 = vadd.f32 %v2228_v20, %v4367_v37  ;;  %v3546_v40 = vadd.f32 %v2299_v53, %v4371_v52  ;;  %v2737_v52 = vld [vmem:[%s5161_s5] ss:$0 sm:$0xff] }
 0x829   :  { %v2734_v49 = vmul.f32 -1.442695, %v3529_v11 }
 0x82a   :  { %v2735_v19 = vmul.f32 -1.442695, %v3530_v46  ;;  %v2736_v48 = vmul.f32 -1.442695, %v3546_v40 }
 0x82b   :  { %3692 = vpow2.f32 %v2734_v49 }
 0x82c   :  { %3694 = vpow2.f32 %v2735_v19 }
 0x82d   :  { %3696 = vpow2.f32 %v2736_v48 }
 0x82e   :  { %3698 = vtanh.f32 %v3545_v63 }
 0x835   :  { %v3693_v42 = vpop.eup %3692 }
 0x836   :  { %v3695_v10 = vpop.eup %3694  ;;  %v2309_v13 = vadd.f32 1.0, %v3693_v42 }
 0x837   :  { %v2315_v26 = vadd.f32 1.0, %v3695_v10  ;;  %v3697_v35 = vpop.eup %3696 }
 0x838   :  { %3700 = vrcp.f32 %v2309_v13  ;;  %v3699_v54 = vpop.eup %3698  ;;  %v2322_v25 = vadd.f32 1.0, %v3697_v35 }
 0x839   :  { %3702 = vrcp.f32 %v2315_v26 }
 0x83a   :  { %3704 = vrcp.f32 %v2322_v25 }
 0x842   :  { %v3701_v37 = vpop.eup %3700 }
 0x843   :  { %v3703_v58 = vpop.eup %3702  ;;  %v2326_v6 = vmul.f32 %v3701_v37, %v3699_v54 }
 0x844   :  { %v2325_v47 = vmul.f32 %v3703_v58, %v4953_v34  ;;  %v3705_v61 = vpop.eup %3704 }
 0x846   :  { %v2821_v59 = vpop.f32.mrb[16].mxu0  ;;  %v2327_v3 = vadd.f32 %v2326_v6, %v2325_v47 }
 0x847   :  { %v2437_v56 = vadd.f32 %v2821_v59, %v2737_v52  ;;  %v2431_v39 = vpop.f32.mrb[17].mxu0 }
 0x848   :  { %v2432_v38 = vadd.f32 %v2737_v52, %v2431_v39  ;;  %3706 = vtanh.f32 %v2327_v3 }
 0x84a   :  { %3708 = vtanh.f32 %v2432_v38  ;;  %v2824_v33 = vpop.f32.mrb[18].mxu0 }
 0x84b   :  { %3710 = vtanh.f32 %v2437_v56  ;;  %v2447_v41 = vadd.f32 %v2824_v33, %v2737_v52  ;;  %v2441_v51 = vpop.f32.mrb[19].mxu0 }
 0x84c   :  { %v2442_v36 = vadd.f32 %v2737_v52, %v2441_v51 }
 0x84e   :  { %3712 = vtanh.f32 %v2442_v36  ;;  %v2827_v14 = vpop.f32.mrb[20].mxu0 }
 0x84f   :  { %3714 = vtanh.f32 %v2447_v41  ;;  %v2457_v34 = vadd.f32 %v2827_v14, %v2737_v52  ;;  %v2451_v27 = vpop.f32.mrb[21].mxu0 }
 0x850   :  { %v2452_v55 = vadd.f32 %v2737_v52, %v2451_v27 }
 0x852   :  { %v3707_v1 = vpop.eup %3706  ;;  %3716 = vtanh.f32 %v2452_v55 }
 0x853   :  { %3718 = vtanh.f32 %v2457_v34  ;;  %v2329_v7 = vmul.f32 %v3707_v1, %v3705_v61 }
 0x854   :  { %v3709_v8 = vpop.eup %3708 }
 0x855   :  { %v3711_v24 = vpop.eup %3710  ;;  %2863 = vmatprep.mubr.f32.mxu1 %v3709_v8  ;;  %2829 = vmatmul.mubr.f32.gmra.mrb[22].mxu0 %v2329_v7 }
 0x856   :  { %2864 = vmatmul.mubr.f32.vlgmr.msra.gmra.mrb[16].mxu1 %v3711_v24 }
 0x858   :  { %v3713_v30 = vpop.eup %3712 }
 0x859   :  { %v3715_v21 = vpop.eup %3714  ;;  %2866 = vmatprep.mubr.f32.mxu1 %v3713_v30 }
 0x85a   :  { %2867 = vmatmul.mubr.f32.gmra.mrb[18].mxu1 %v3715_v21 }
 0x85c   :  { %v3717_v12 = vpop.eup %3716 }
 0x85d   :  { %v3719_v57 = vpop.eup %3718  ;;  %2869 = vmatprep.mubr.f32.mxu1 %v3717_v12 }
 0x85e   :  { %2870 = vmatmul.mubr.f32.gmra.mrb[20].mxu1 %v3719_v57 }
 0x928   :  { %v2830_v9 = vpop.f32.mrb[22].mxu0 }
 0x929   :  { %v2467_v23 = vadd.f32 %v2830_v9, %v2737_v52  ;;  %v2865_v50 = vpop.f32.mrb[16].mxu1  ;;  %v2461_v31 = vpop.f32.mrb[23].mxu0 }
 0x92a   :  { %v5063_v5 = vadd.f32 %v2865_v50, %v2738_v4  ;;  %v2462_v15 = vadd.f32 %v2737_v52, %v2461_v31  ;;  %v2567_v17 = vpop.f32.mrb[17].mxu1 }
 0x92b   :  { %v5066_v60 = vadd.f32 %v2738_v4, %v2567_v17 }
 0x92c   :  { %3720 = vtanh.f32 %v2462_v15  ;;  %2608 = vmax.xlane.f32.xlu0 %v5063_v5 }
 0x92d   :  { %3722 = vtanh.f32 %v2467_v23  ;;  %v2868_v28 = vpop.f32.mrb[18].mxu1 }
 0x92e   :  { %v5068_v43 = vadd.f32 %v2868_v28, %v2738_v4  ;;  %v2577_v45 = vpop.f32.mrb[19].mxu1 }
 0x92f   :  { %v5072_v16 = vadd.f32 %v2738_v4, %v2577_v45 }
 0x930   :  { %2612 = vmax.xlane.f32.xlu1 %v5068_v43  ;;  %2606 = vmax.xlane.f32.xlu0 %v5066_v60 }
 0x931   :  { %v2871_v2 = vpop.f32.mrb[20].mxu1 }
 0x932   :  { %v2587_v29 = vpop.f32.mrb[21].mxu1  ;;  %v5078_v62 = vadd.f32 %v2871_v2, %v2738_v4 }
 0x933   :  { %v5074_v32 = vadd.f32 %v2738_v4, %v2587_v29 }
 0x934   :  { %2610 = vmax.xlane.f32.xlu1 %v5072_v16 }
 0x935   :  { %2614 = vmax.xlane.f32.xlu0 %v5074_v32 }
 0x936   :  { %v3721_v44 = vpop.eup %3720 }
 0x937   :  { %v3723_v18 = vpop.eup %3722  ;;  %2872 = vmatprep.mubr.f32.mxu1 %v3721_v44 }
 0x938   :  { %2616 = vmax.xlane.f32.xlu1 %v5078_v62  ;;  %2873 = vmatmul.mubr.f32.gmra.mrb[22].mxu1 %v3723_v18 }
 0x9b9   :  { %v5081_v22 = vpop.xlane.xlu0 %2608 }
 0x9ba   :  { %v2623_v53 = vsub.f32 %v5063_v5, %v5081_v22 }
 0x9bc   :  { %v2632_v49 = vmul.f32 1.442695, %v2623_v53 }
 0x9bd   :  { %v5083_v0 = vpop.xlane.xlu1 %2612  ;;  %v5085_v11 = vpop.xlane.xlu0 %2606 }
 0x9be   :  { %v2622_v46 = vsub.f32 %v5066_v60, %v5085_v11  ;;  %v2625_v19 = vsub.f32 %v5068_v43, %v5083_v0  ;;  %3724 = vpow2.f32 %v2632_v49 }
 0x9c0   :  { %v2630_v40 = vmul.f32 1.442695, %v2622_v46  ;;  %v2636_v10 = vmul.f32 1.442695, %v2625_v19 }
 0x9c1   :  { %v5087_v20 = vpop.xlane.xlu1 %2610 }
 0x9c2   :  { %v2624_v48 = vsub.f32 %v5072_v16, %v5087_v20  ;;  %v5099_v42 = vpop.xlane.xlu0 %2614  ;;  %3726 = vpow2.f32 %v2630_v40 }
 0x9c3   :  { %v2626_v35 = vsub.f32 %v5074_v32, %v5099_v42  ;;  %3728 = vpow2.f32 %v2636_v10 }
 0x9c4   :  { %v2634_v26 = vmul.f32 1.442695, %v2624_v48 }
 0x9c5   :  { %v5097_v63 = vpop.xlane.xlu1 %2616  ;;  %v2638_v58 = vmul.f32 1.442695, %v2626_v35 }
 0x9c6   :  { %v2627_v13 = vsub.f32 %v5078_v62, %v5097_v63  ;;  %3730 = vpow2.f32 %v2634_v26 }
 0x9c8   :  { %v2640_v54 = vmul.f32 1.442695, %v2627_v13  ;;  %v3725_v52 = vpop.eup %3724 }
 0x9ca   :  { %3732 = vpow2.f32 %v2640_v54 }
 0x9cb   :  { %3734 = vpow2.f32 %v2638_v58 }
 0x9cc   :  { %v3727_v59 = vpop.eup %3726 }
 0x9cd   :  { %v3729_v3 = vpop.eup %3728 }
 0x9d0   :  { %v3731_v56 = vpop.eup %3730 }
 0x9d4   :  { %v3733_v39 = vpop.eup %3732 }
 0x9d5   :  { %v3735_v38 = vpop.eup %3734 }
 0xa0b   :  { %v2874_v37 = vpop.f32.mrb[22].mxu1 }
 0xa0c   :  { %v5105_v6 = vadd.f32 %v2874_v37, %v2738_v4  ;;  %v2597_v25 = vpop.f32.mrb[23].mxu1 }
 0xa0d   :  { %v5107_v47 = vadd.f32 %v2738_v4, %v2597_v25 }
 0xa0e   :  { %2620 = vmax.xlane.f32.xlu1 %v5105_v6 }
 0xa0f   :  { %2618 = vmax.xlane.f32.xlu0 %v5107_v47 }
 0xa12   :  { %2648 = vadd.xlane.f32.xlu1 %v3725_v52 }
 0xa13   :  { %2646 = vadd.xlane.f32.xlu0 %v3727_v59 }
 0xa16   :  { %2652 = vadd.xlane.f32.xlu1 %v3729_v3 }
 0xa17   :  { %2650 = vadd.xlane.f32.xlu0 %v3731_v56 }
 0xa1a   :  { %2656 = vadd.xlane.f32.xlu1 %v3733_v39 }
 0xa1b   :  { %2654 = vadd.xlane.f32.xlu0 %v3735_v38 }
 0xa9b   :  { %v5111_v33 = vpop.xlane.xlu1 %2620 }
 0xa9c   :  { %v2629_v41 = vsub.f32 %v5105_v6, %v5111_v33  ;;  %v2619_v51 = vpop.xlane.xlu0 %2618 }
 0xa9d   :  { %v2628_v36 = vsub.f32 %v5107_v47, %v2619_v51 }
 0xa9e   :  { %v2644_v14 = vmul.f32 1.442695, %v2629_v41 }
 0xa9f   :  { %v2642_v34 = vmul.f32 1.442695, %v2628_v36  ;;  %v2649_v27 = vpop.xlane.xlu1 %2648 }
 0xaa0   :  { %3736 = vpow2.f32 %v2644_v14  ;;  %v2647_v55 = vpop.xlane.xlu0 %2646 }
 0xaa1   :  { %3738 = vpow2.f32 %v2642_v34 }
 0xaa2   :  { %3740 = vlog2.f32 %v2649_v27 }
 0xaa3   :  { %3742 = vlog2.f32 %v2647_v55  ;;  %v2653_v61 = vpop.xlane.xlu1 %2652 }
 0xaa4   :  { %3744 = vlog2.f32 %v2653_v61  ;;  %v2651_v1 = vpop.xlane.xlu0 %2650 }
 0xaa5   :  { %3746 = vlog2.f32 %v2651_v1 }
 0xaa7   :  { %v2657_v7 = vpop.xlane.xlu1 %2656 }
 0xaa8   :  { %3748 = vlog2.f32 %v2657_v7  ;;  %v2655_v8 = vpop.xlane.xlu0 %2654 }
 0xaa9   :  { %3750 = vlog2.f32 %v2655_v8 }
 0xaaa   :  { %v3737_v24 = vpop.eup %3736 }
 0xaab   :  { %v3739_v30 = vpop.eup %3738  ;;  %2660 = vadd.xlane.f32.xlu1 %v3737_v24 }
 0xaac   :  { %v3741_v21 = vpop.eup %3740  ;;  %2658 = vadd.xlane.f32.xlu0 %v3739_v30 }
 0xaad   :  { %v3743_v12 = vpop.eup %3742  ;;  %v2665_v57 = vmul.f32 0.6931472, %v3741_v21 }
 0xaae   :  { %v3745_v4 = vpop.eup %3744  ;;  %v2663_v9 = vmul.f32 0.6931472, %v3743_v12 }
 0xaaf   :  { %v3747_v23 = vpop.eup %3746  ;;  %v2679_v50 = vadd.f32 %v2665_v57, %v5081_v22  ;;  %v2669_v31 = vmul.f32 0.6931472, %v3745_v4 }
 0xab0   :  { %v2678_v15 = vadd.f32 %v2663_v9, %v5085_v11  ;;  %v2667_v17 = vmul.f32 0.6931472, %v3747_v23 }
 0xab1   :  { %v2687_v28 = vsub.f32 %v5063_v5, %v2679_v50  ;;  %v2681_v45 = vadd.f32 %v2669_v31, %v5083_v0 }
 0xab2   :  { %v3749_v2 = vpop.eup %3748  ;;  %v2686_v29 = vsub.f32 %v5066_v60, %v2678_v15  ;;  %v2680_v44 = vadd.f32 %v2667_v17, %v5087_v20 }
 0xab3   :  { %v3751_v18 = vpop.eup %3750  ;;  %2695 = vst [vmem:[%s5163_s8 + $0x8] sm:$0xff] %v2687_v28  ;;  %v2689_v22 = vsub.f32 %v5068_v43, %v2681_v45  ;;  %v2673_v53 = vmul.f32 0.6931472, %v3749_v2 }
 0xab4   :  { %2694 = vst [vmem:[%s5163_s8] sm:$0xff] %v2686_v29  ;;  %v2688_v5 = vsub.f32 %v5072_v16, %v2680_v44  ;;  %v2671_v0 = vmul.f32 0.6931472, %v3751_v18 }
 0xab5   :  { %2697 = vst [vmem:[%s5163_s8 + $0x18] sm:$0xff] %v2689_v22  ;;  %v2683_v60 = vadd.f32 %v2673_v53, %v5097_v63 }
 0xab6   :  { %2696 = vst [vmem:[%s5163_s8 + $0x10] sm:$0xff] %v2688_v5  ;;  %v2682_v43 = vadd.f32 %v2671_v0, %v5099_v42 }
 0xab7   :  { %v2691_v11 = vsub.f32 %v5078_v62, %v2683_v60 }
 0xab8   :  { %v2690_v20 = vsub.f32 %v5074_v32, %v2682_v43 }
 0xab9   :  { %2699 = vst [vmem:[%s5163_s8 + $0x28] sm:$0xff] %v2691_v11 }
 0xaba   :  { %2698 = vst [vmem:[%s5163_s8 + $0x20] sm:$0xff] %v2690_v20 }
 0xb38   :  { %v2661_v16 = vpop.xlane.xlu1 %2660 }
 0xb39   :  { %3752 = vlog2.f32 %v2661_v16  ;;  %v2659_v46 = vpop.xlane.xlu0 %2658 }
 0xb3a   :  { %3754 = vlog2.f32 %v2659_v46 }
 0xb43   :  { %v3753_v49 = vpop.eup %3752 }
 0xb44   :  { %v3755_v19 = vpop.eup %3754  ;;  %v2677_v40 = vmul.f32 0.6931472, %v3753_v49 }
 0xb45   :  { %v2675_v48 = vmul.f32 0.6931472, %v3755_v19 }
 0xb46   :  { %v2685_v62 = vadd.f32 %v2677_v40, %v5111_v33 }
 0xb47   :  { %v2684_v63 = vadd.f32 %v2675_v48, %v2619_v51 }
 0xb48   :  { %v2693_v32 = vsub.f32 %v5105_v6, %v2685_v62 }
 0xb49   :  { %v2692_v42 = vsub.f32 %v5107_v47, %v2684_v63 }
 0xb4a   :  { %2701 = vst [vmem:[%s5163_s8 + $0x38] sm:$0xff] %v2693_v32 }
 0xb4b   :  { %2700 = vst [vmem:[%s5163_s8 + $0x30] sm:$0xff] %v2692_v42 }

</bundles_post_ra>
